<compile_context>
chip_gen: v5e
topology: v5e:2x2
jax: 0.10.0
libtpu: 0.0.40
codegen_flags: <defaults>
</compile_context>

<pallas_src>
import functools

import jax
import jax.numpy as jnp
import numpy as np
from jax.experimental import pallas as pl
from jax.experimental.pallas import tpu as pltpu

# ---- "opt" hyper-parameters (small, consistent with the module __init__) ----
NUM_BOXES = 4                 # opt.num_boxes
NUM_FRAMES = 16               # opt.num_frames
NR_FRAMES = NUM_FRAMES // 2   # 8
COORD_DIM = 128               # opt.coord_feature_dim
HALF_DIM = COORD_DIM // 2
NUM_CLASSES = 16              # opt.num_classes
IMG_FEATURE_DIM = 64          # opt.img_feature_dim (unused by this forward)
BN_EPS = 1e-5
OUT_PAD = 128                 # lane-dense padded classifier output width


# ----------------------------- Pallas kernel -------------------------------
def _kernel(BB, NB, NF, D,
            xin_ref,                                  # (R, 8) coords+onehot
            w1_ref, emb3_ref,                         # f32 VPU-path weights
            w2_ref, wsq_ref, w6_ref, wc2_ref, wc3_ref,  # bf16 MXU weights
            bias_ref, bc2_ref,                        # f32 shifts/biases
            out_ref):
    f32 = jnp.float32
    bf16 = jnp.bfloat16
    relu = lambda v: jnp.maximum(v, 0.0)
    # bf16 matmul inputs, f32 accumulation (weights are already stored bf16).
    mm = lambda a, w: jnp.dot(a.astype(bf16), w, preferred_element_type=f32)
    R = BB * NB * NF                       # rows handled this grid step
    Dh = w1_ref.shape[1]                   # coord_feature_dim // 2

    # packed shift vectors (BN shifts / biases); scales folded into weights.
    b1 = bias_ref[0:1, :Dh]
    b2 = bias_ref[1:2, :]
    b3 = bias_ref[2:3, :]
    b4 = bias_ref[3:4, :]
    b5 = bias_ref[4:5, :]
    b6 = bias_ref[5:6, :]
    b7 = bias_ref[6:7, :]
    bc1 = bias_ref[7:8, :]
    bc3 = bias_ref[8:9, :]

    xin = xin_ref[...]                                               # (R, 8)

    # ---- coord_to_feature layer 1 on the VPU (K=4 would waste the MXU) ----
    h = (b1
         + xin[:, 0:1] * w1_ref[0:1, :]
         + xin[:, 1:2] * w1_ref[1:2, :]
         + xin[:, 2:3] * w1_ref[2:3, :]
         + xin[:, 3:4] * w1_ref[3:4, :])
    h = relu(h)                                                      # (R, Dh)
    h = relu(mm(h, w2_ref[...]) + b2)                                # (R, D)

    # ---- category embedding path on the VPU (K=3) + coord_category_fusion --
    cat_feat = (xin[:, 4:5] * emb3_ref[0:1, :]
                + xin[:, 5:6] * emb3_ref[1:2, :]
                + xin[:, 6:7] * emb3_ref[2:3, :])                    # (R, D)
    bf = relu(mm(h, wsq_ref[0]) + cat_feat + b3)                     # (R, D)

    # ---- spatial message folded into w4:  bf@w4a' + (sum_boxes bf)@w4s ----
    bf4 = bf.reshape(BB, NB, NF, D)
    ssum = jnp.sum(bf4, axis=1)                                      # (BB, NF, D)
    smsg = mm(ssum.reshape(BB * NF, D), wsq_ref[2]).reshape(BB, 1, NF, D)
    h4 = mm(bf, wsq_ref[1]).reshape(BB, NB, NF, D) + smsg + b4
    h = relu(h4).reshape(R, D)
    h = relu(mm(h, wsq_ref[3]) + b5)                                 # (R, D)

    # ---- box_feature_fusion: frame concat is a plain row-major reshape ----
    hcat = h.reshape(BB * NB, NF * D)                                # (BB*NB, NF*D)
    h = relu(mm(hcat, w6_ref[...]) + b6)
    h = relu(mm(h, wsq_ref[4]) + b7)                                 # (BB*NB, D)

    # ---- mean over boxes (1/NB folded into wc1) + classifier ----
    vsum = jnp.sum(h.reshape(BB, NB, D), axis=1)                     # (BB, D)
    c = relu(mm(vsum, wsq_ref[5]) + bc1)
    c = relu(mm(c, wc2_ref[...]) + bc2_ref[...])
    out_ref[...] = mm(c, wc3_ref[...]) + bc3                         # (BB, OUT_PAD)


def _const_spec(shape):
    nd = len(shape)
    return pl.BlockSpec(shape, lambda i, _nd=nd: (0,) * _nd)


def _round_up(v, m):
    return -(-v // m) * m


# ------------------------------- wrapper ------------------------------------
def video_model_coord_latent_forward(params, global_img_input, box_categories,
                                     box_input, video_label=None,
                                     is_inference=True):
    del video_label, is_inference  # unused by the torch forward as well
    b = global_img_input.shape[0]
    NB, NF, D, Dh, A = NUM_BOXES, NR_FRAMES, COORD_DIM, HALF_DIM, NUM_CLASSES
    N = NB * NF
    bf16 = jnp.bfloat16

    # Box-major flatten, identical to torch's .transpose(2, 1).view(...).
    x4 = jnp.transpose(box_input.astype(jnp.float32), (0, 2, 1, 3)).reshape(b * N, 4)
    cats = jnp.transpose(box_categories.astype(jnp.int32), (0, 2, 1)).reshape(b * N)
    # Note: categories outside [0, 3) silently map to a zero embedding here
    # (PyTorch nn.Embedding would raise instead).
    oh = jax.nn.one_hot(cats, 3, dtype=jnp.float32)
    # Pack coords + one-hot + pad into one (b*N, 8) input -> a single DMA stream.
    xin = jnp.concatenate([x4, oh, jnp.zeros((b * N, 1), jnp.float32)], axis=1)

    # ---- host-side weight folding (eval-mode BN, msg / mean scales) ----
    p = params
    w1 = (p['w1'] * p['s1']).astype(jnp.float32)                      # (4, Dh) VPU
    emb3 = ((p['embw'] @ p['w3'][D:]) * p['s3']).astype(jnp.float32)  # (3, D) VPU
    w2 = (p['w2'] * p['s2']).astype(bf16)                             # (Dh, D)
    w3a = p['w3'][:D] * p['s3']
    w4a = (p['w4'][:D] - p['w4'][D:] / float(NB - 1)) * p['s4']       # bf fold
    w4s = (p['w4'][D:] / float(NB - 1)) * p['s4']                     # box-sum fold
    w5 = p['w5'] * p['s5']
    w7 = p['w7'] * p['s7']
    wc1 = p['wc1'] / float(NB)            # box mean folded into classifier L1
    wsq = jnp.stack([w3a, w4a, w4s, w5, w7, wc1], axis=0).astype(bf16)  # (6, D, D)
    w6 = (p['w6'] * p['s6']).astype(bf16)                             # (NF*D, D)
    wc2 = p['wc2'].astype(bf16)                                       # (D, 512)
    wc3p = jnp.zeros((512, OUT_PAD), jnp.float32).at[:, :A].set(p['wc3']).astype(bf16)

    biases = jnp.zeros((9, D), jnp.float32)
    biases = biases.at[0, :Dh].set(p['t1'][0])
    biases = biases.at[1].set(p['t2'][0])
    biases = biases.at[2].set(p['t3'][0])
    biases = biases.at[3].set(p['t4'][0])
    biases = biases.at[4].set(p['t5'][0])
    biases = biases.at[5].set(p['t6'][0])
    biases = biases.at[6].set(p['t7'][0])
    biases = biases.at[7].set(p['bc1'][0])
    biases = biases.at[8, :A].set(p['bc3'][0])
    bc2 = p['bc2']                                                    # (1, 512)

    # ---- per-generation batch blocking ----
    # v5e/v6e (1 TensorCore): one fat grid step over the whole batch (cap 32)
    # to avoid the ~0.35us/step overhead and keep matmul M large.
    # v7x (2 TensorCores): aim for >=2 grid steps so dimension_semantics
    # ("parallel",) shards across both cores; keep BB a multiple of 8 so the
    # (BB, 128) output block stays (8,128)-aligned when the grid has >1 step.
    try:
        kind = jax.devices()[0].device_kind.lower()
    except Exception:  # pragma: no cover - defensive, assume single-TC chip
        kind = ""
    two_tc = ("v7" in kind) or ("7x" in kind)
    if b > 8 and two_tc:
        BB = min(_round_up(-(-b // 2), 8), 32)
    elif b > 32:
        BB = 32
    else:
        BB = b
    bp = _round_up(b, BB)
    pad_rows = (bp - b) * N
    if pad_rows:
        xin = jnp.concatenate([xin, jnp.zeros((pad_rows, 8), jnp.float32)], axis=0)

    flat = [w1, emb3, w2, wsq, w6, wc2, wc3p, biases, bc2]
    # Constant-index weights are fetched once per call; default double
    # buffering costs ~0.75 MB extra VMEM which is negligible on all chips.
    in_specs = [pl.BlockSpec((BB * N, 8), lambda i: (i, 0))] \
        + [_const_spec(tuple(w.shape)) for w in flat]

    out = pl.pallas_call(
        functools.partial(_kernel, BB, NB, NF, D),
        out_shape=jax.ShapeDtypeStruct((bp, OUT_PAD), jnp.float32),
        grid=(bp // BB,),
        in_specs=in_specs,
        out_specs=pl.BlockSpec((BB, OUT_PAD), lambda i: (i, 0)),
        compiler_params=pltpu.CompilerParams(dimension_semantics=("parallel",)),
    )(xin, *flat)
    return out[:b, :A]


# ----------------------- deterministic parameter init -----------------------
def init_params(key):
    D, Dh, NF, A = COORD_DIM, HALF_DIM, NR_FRAMES, NUM_CLASSES
    ks = iter(jax.random.split(key, 64))

    def linear(i, o):
        return jax.random.normal(next(ks), (i, o), jnp.float32) / jnp.sqrt(float(i))

    def bn(n):  # eval-mode BN expressed as per-feature scale/shift
        gamma = jax.random.uniform(next(ks), (1, n), jnp.float32, 0.5, 1.5)
        beta = 0.1 * jax.random.normal(next(ks), (1, n), jnp.float32)
        mean = 0.1 * jax.random.normal(next(ks), (1, n), jnp.float32)
        var = jax.random.uniform(next(ks), (1, n), jnp.float32, 0.5, 1.5)
        scale = gamma / jnp.sqrt(var + BN_EPS)
        shift = beta - mean * scale
        return scale, shift

    embw = jax.random.normal(next(ks), (3, Dh), jnp.float32)
    embw = embw.at[0].set(0.0)                                     # padding_idx=0

    params = {'embw': embw}
    params['w1'] = linear(4, Dh);        params['s1'], params['t1'] = bn(Dh)
    params['w2'] = linear(Dh, D);        params['s2'], params['t2'] = bn(D)
    params['w3'] = linear(D + Dh, D);    params['s3'], params['t3'] = bn(D)
    params['w4'] = linear(2 * D, D);     params['s4'], params['t4'] = bn(D)
    params['w5'] = linear(D, D);         params['s5'], params['t5'] = bn(D)
    params['w6'] = linear(NF * D, D);    params['s6'], params['t6'] = bn(D)
    params['w7'] = linear(D, D);         params['s7'], params['t7'] = bn(D)
    params['wc1'] = linear(D, D)
    params['bc1'] = 0.01 * jax.random.normal(next(ks), (1, D), jnp.float32)
    params['wc2'] = linear(D, 512)
    params['bc2'] = 0.01 * jax.random.normal(next(ks), (1, 512), jnp.float32)
    params['wc3'] = linear(512, A)
    params['bc3'] = 0.01 * jax.random.normal(next(ks), (1, A), jnp.float32)
    return params


# ------------------- pure-JAX reference (mirrors torch order) ----------------
def reference_forward(p, global_img_input, box_categories, box_input):
    b = global_img_input.shape[0]
    NB, NF, D = NUM_BOXES, NR_FRAMES, COORD_DIM
    bi = jnp.transpose(box_input.astype(jnp.float32), (0, 2, 1, 3)).reshape(b * NB * NF, 4)
    bc = jnp.transpose(box_categories.astype(jnp.int32), (0, 2, 1)).reshape(b * NB * NF)
    emb = p['embw'][bc]
    h = jnp.maximum(bi @ p['w1'] * p['s1'] + p['t1'], 0.)
    h = jnp.maximum(h @ p['w2'] * p['s2'] + p['t2'], 0.)
    bf = jnp.maximum(jnp.concatenate([h, emb], axis=1) @ p['w3'] * p['s3'] + p['t3'], 0.)
    bf = bf.reshape(b, NB, NF, D)
    sm = (bf.sum(axis=1, keepdims=True) - bf) / (NB - 1)
    cat2 = jnp.concatenate([bf, sm], axis=3).reshape(b * NB * NF, 2 * D)
    h = jnp.maximum(cat2 @ p['w4'] * p['s4'] + p['t4'], 0.)
    h = jnp.maximum(h @ p['w5'] * p['s5'] + p['t5'], 0.)
    h = h.reshape(b * NB, NF * D)
    h = jnp.maximum(h @ p['w6'] * p['s6'] + p['t6'], 0.)
    h = jnp.maximum(h @ p['w7'] * p['s7'] + p['t7'], 0.)
    vf = h.reshape(b, NB, D).mean(axis=1)
    c = jnp.maximum(vf @ p['wc1'] + p['bc1'], 0.)
    c = jnp.maximum(c @ p['wc2'] + p['bc2'], 0.)
    return c @ p['wc3'] + p['bc3']


# ---------------------------------- main -------------------------------------
if __name__ == "__main__":
    key = jax.random.PRNGKey(0)
    k_param, k_img, k_box, k_cat, k_lab = jax.random.split(key, 5)

    params = init_params(k_param)

    b = 2
    global_img_input = jax.random.normal(
        k_img, (b, 3, NUM_FRAMES, 8, 8), jnp.float32)               # (b, C, T, H, W)
    box_input = jax.random.uniform(
        k_box, (b, NR_FRAMES, NUM_BOXES, 4), jnp.float32)           # (b, T/2, boxes, 4)
    box_categories = jax.random.randint(
        k_cat, (b, NR_FRAMES, NUM_BOXES), 0, 3, jnp.int32)          # (b, T/2, boxes)
    video_label = jax.random.randint(k_lab, (b,), 0, NUM_CLASSES, jnp.int32)

    out = video_model_coord_latent_forward(
        params, global_img_input, box_categories, box_input, video_label)
    out = jax.block_until_ready(out)

    ref = jax.block_until_ready(
        reference_forward(params, global_img_input, box_categories, box_input))

    assert out.shape == (b, NUM_CLASSES), out.shape
    # Tolerance: the kernel feeds explicit bf16 inputs to every matmul (with
    # f32 accumulation) and folds the eval-mode BN scales into the weights,
    # while the f32 reference uses XLA's default TPU matmul precision.  The
    # difference accumulates bf16-level rounding over a ~10-layer serial chain
    # with O(1) activations, so a 5e-2 absolute/relative bound is used.
    if not np.allclose(np.asarray(out), np.asarray(ref), rtol=5e-2, atol=5e-2):
        raise AssertionError(
            f"kernel/reference mismatch, max |diff| = {np.max(np.abs(out - ref))}")

    print("KERNEL_OK")
</pallas_src>

<mosaic_0001>
module attributes {stable_mosaic.version = 11 : i64} {
  func.func @_kernel(%arg0: i32, %arg1: memref<64x8xf32, #tpu.memory_space<vmem>>, %arg2: memref<4x64xf32, #tpu.memory_space<vmem>>, %arg3: memref<3x128xf32, #tpu.memory_space<vmem>>, %arg4: memref<64x128xbf16, #tpu.memory_space<vmem>>, %arg5: memref<6x128x128xbf16, #tpu.memory_space<vmem>>, %arg6: memref<1024x128xbf16, #tpu.memory_space<vmem>>, %arg7: memref<128x512xbf16, #tpu.memory_space<vmem>>, %arg8: memref<512x128xbf16, #tpu.memory_space<vmem>>, %arg9: memref<9x128xf32, #tpu.memory_space<vmem>>, %arg10: memref<1x512xf32, #tpu.memory_space<vmem>>, %arg11: memref<2x128xf32, #tpu.memory_space<vmem>>) attributes {dimension_semantics = [#tpu.dimension_semantics<parallel>], iteration_bounds = array<i64: 1>, scalar_prefetch = 0 : i64, scratch_operands = 0 : i64, tpu.core_type = #tpu.core_type<tc>, window_params = [{transform_indices = @transform_0, window_bounds = array<i64: 64, 8>}, {pipeline_mode = #tpu.pipeline_mode<synchronous>, transform_indices = @transform_1, window_bounds = array<i64: 4, 64>}, {pipeline_mode = #tpu.pipeline_mode<synchronous>, transform_indices = @transform_2, window_bounds = array<i64: 3, 128>}, {pipeline_mode = #tpu.pipeline_mode<synchronous>, transform_indices = @transform_3, window_bounds = array<i64: 64, 128>}, {pipeline_mode = #tpu.pipeline_mode<synchronous>, transform_indices = @transform_4, window_bounds = array<i64: 6, 128, 128>}, {pipeline_mode = #tpu.pipeline_mode<synchronous>, transform_indices = @transform_5, window_bounds = array<i64: 1024, 128>}, {pipeline_mode = #tpu.pipeline_mode<synchronous>, transform_indices = @transform_6, window_bounds = array<i64: 128, 512>}, {pipeline_mode = #tpu.pipeline_mode<synchronous>, transform_indices = @transform_7, window_bounds = array<i64: 512, 128>}, {pipeline_mode = #tpu.pipeline_mode<synchronous>, transform_indices = @transform_8, window_bounds = array<i64: 9, 128>}, {pipeline_mode = #tpu.pipeline_mode<synchronous>, transform_indices = @transform_9, window_bounds = array<i64: 1, 512>}, {transform_indices = @transform_10, window_bounds = array<i64: 2, 128>}]} {
    %c0 = arith.constant 0 : index
    %c0_0 = arith.constant 0 : index
    %0 = vector.load %arg9[%c0, %c0_0] : memref<9x128xf32, #tpu.memory_space<vmem>>, vector<1x64xf32>
    %c1 = arith.constant 1 : index
    %c0_1 = arith.constant 0 : index
    %1 = vector.load %arg9[%c1, %c0_1] : memref<9x128xf32, #tpu.memory_space<vmem>>, vector<1x128xf32>
    %c2 = arith.constant 2 : index
    %c0_2 = arith.constant 0 : index
    %2 = vector.load %arg9[%c2, %c0_2] : memref<9x128xf32, #tpu.memory_space<vmem>>, vector<1x128xf32>
    %c3 = arith.constant 3 : index
    %c0_3 = arith.constant 0 : index
    %3 = vector.load %arg9[%c3, %c0_3] : memref<9x128xf32, #tpu.memory_space<vmem>>, vector<1x128xf32>
    %c4 = arith.constant 4 : index
    %c0_4 = arith.constant 0 : index
    %4 = vector.load %arg9[%c4, %c0_4] : memref<9x128xf32, #tpu.memory_space<vmem>>, vector<1x128xf32>
    %c5 = arith.constant 5 : index
    %c0_5 = arith.constant 0 : index
    %5 = vector.load %arg9[%c5, %c0_5] : memref<9x128xf32, #tpu.memory_space<vmem>>, vector<1x128xf32>
    %c6 = arith.constant 6 : index
    %c0_6 = arith.constant 0 : index
    %6 = vector.load %arg9[%c6, %c0_6] : memref<9x128xf32, #tpu.memory_space<vmem>>, vector<1x128xf32>
    %c7 = arith.constant 7 : index
    %c0_7 = arith.constant 0 : index
    %7 = vector.load %arg9[%c7, %c0_7] : memref<9x128xf32, #tpu.memory_space<vmem>>, vector<1x128xf32>
    %c8 = arith.constant 8 : index
    %c0_8 = arith.constant 0 : index
    %8 = vector.load %arg9[%c8, %c0_8] : memref<9x128xf32, #tpu.memory_space<vmem>>, vector<1x128xf32>
    %c0_9 = arith.constant 0 : index
    %c0_10 = arith.constant 0 : index
    %9 = vector.load %arg1[%c0_9, %c0_10] : memref<64x8xf32, #tpu.memory_space<vmem>>, vector<64x8xf32>
    %10 = vector.extract_strided_slice %9 {offsets = [0, 0], sizes = [64, 1], strides = [1, 1]} : vector<64x8xf32> to vector<64x1xf32>
    %c0_11 = arith.constant 0 : index
    %c0_12 = arith.constant 0 : index
    %11 = vector.load %arg2[%c0_11, %c0_12] : memref<4x64xf32, #tpu.memory_space<vmem>>, vector<1x64xf32>
    %12 = vector.broadcast %10 : vector<64x1xf32> to vector<64x64xf32>
    %13 = vector.broadcast %11 : vector<1x64xf32> to vector<64x64xf32>
    %14 = arith.mulf %12, %13 : vector<64x64xf32>
    %15 = vector.broadcast %0 : vector<1x64xf32> to vector<64x64xf32>
    %16 = arith.addf %15, %14 : vector<64x64xf32>
    %17 = vector.extract_strided_slice %9 {offsets = [0, 1], sizes = [64, 1], strides = [1, 1]} : vector<64x8xf32> to vector<64x1xf32>
    %c1_13 = arith.constant 1 : index
    %c0_14 = arith.constant 0 : index
    %18 = vector.load %arg2[%c1_13, %c0_14] : memref<4x64xf32, #tpu.memory_space<vmem>>, vector<1x64xf32>
    %19 = vector.broadcast %17 : vector<64x1xf32> to vector<64x64xf32>
    %20 = vector.broadcast %18 : vector<1x64xf32> to vector<64x64xf32>
    %21 = arith.mulf %19, %20 : vector<64x64xf32>
    %22 = arith.addf %16, %21 : vector<64x64xf32>
    %23 = vector.extract_strided_slice %9 {offsets = [0, 2], sizes = [64, 1], strides = [1, 1]} : vector<64x8xf32> to vector<64x1xf32>
    %c2_15 = arith.constant 2 : index
    %c0_16 = arith.constant 0 : index
    %24 = vector.load %arg2[%c2_15, %c0_16] : memref<4x64xf32, #tpu.memory_space<vmem>>, vector<1x64xf32>
    %25 = vector.broadcast %23 : vector<64x1xf32> to vector<64x64xf32>
    %26 = vector.broadcast %24 : vector<1x64xf32> to vector<64x64xf32>
    %27 = arith.mulf %25, %26 : vector<64x64xf32>
    %28 = arith.addf %22, %27 : vector<64x64xf32>
    %29 = vector.extract_strided_slice %9 {offsets = [0, 3], sizes = [64, 1], strides = [1, 1]} : vector<64x8xf32> to vector<64x1xf32>
    %c3_17 = arith.constant 3 : index
    %c0_18 = arith.constant 0 : index
    %30 = vector.load %arg2[%c3_17, %c0_18] : memref<4x64xf32, #tpu.memory_space<vmem>>, vector<1x64xf32>
    %31 = vector.broadcast %29 : vector<64x1xf32> to vector<64x64xf32>
    %32 = vector.broadcast %30 : vector<1x64xf32> to vector<64x64xf32>
    %33 = arith.mulf %31, %32 : vector<64x64xf32>
    %34 = arith.addf %28, %33 : vector<64x64xf32>
    %cst = arith.constant 0.000000e+00 : f32
    %35 = vector.broadcast %cst : f32 to vector<64x64xf32>
    %36 = arith.maximumf %34, %35 : vector<64x64xf32>
    %c0_19 = arith.constant 0 : index
    %c0_20 = arith.constant 0 : index
    %37 = vector.load %arg4[%c0_19, %c0_20] : memref<64x128xbf16, #tpu.memory_space<vmem>>, vector<64x128xbf16>
    %38 = arith.truncf %36 : vector<64x64xf32> to vector<64x64xbf16>
    %cst_21 = arith.constant dense<0.000000e+00> : vector<64x128xf32>
    %39 = tpu.matmul %38, %37, %cst_21 {dimension_numbers = #tpu.dot_dimension_numbers<[1], [0], [0], [1], [0, 0, 1, 1], [], []>} : vector<64x64xbf16>, vector<64x128xbf16>, vector<64x128xf32> -> vector<64x128xf32>
    %40 = vector.broadcast %1 : vector<1x128xf32> to vector<64x128xf32>
    %41 = arith.addf %39, %40 : vector<64x128xf32>
    %cst_22 = arith.constant 0.000000e+00 : f32
    %42 = vector.broadcast %cst_22 : f32 to vector<64x128xf32>
    %43 = arith.maximumf %41, %42 : vector<64x128xf32>
    %44 = vector.extract_strided_slice %9 {offsets = [0, 4], sizes = [64, 1], strides = [1, 1]} : vector<64x8xf32> to vector<64x1xf32>
    %c0_23 = arith.constant 0 : index
    %c0_24 = arith.constant 0 : index
    %45 = vector.load %arg3[%c0_23, %c0_24] : memref<3x128xf32, #tpu.memory_space<vmem>>, vector<1x128xf32>
    %46 = vector.broadcast %44 : vector<64x1xf32> to vector<64x128xf32>
    %47 = vector.broadcast %45 : vector<1x128xf32> to vector<64x128xf32>
    %48 = arith.mulf %46, %47 : vector<64x128xf32>
    %49 = vector.extract_strided_slice %9 {offsets = [0, 5], sizes = [64, 1], strides = [1, 1]} : vector<64x8xf32> to vector<64x1xf32>
    %c1_25 = arith.constant 1 : index
    %c0_26 = arith.constant 0 : index
    %50 = vector.load %arg3[%c1_25, %c0_26] : memref<3x128xf32, #tpu.memory_space<vmem>>, vector<1x128xf32>
    %51 = vector.broadcast %49 : vector<64x1xf32> to vector<64x128xf32>
    %52 = vector.broadcast %50 : vector<1x128xf32> to vector<64x128xf32>
    %53 = arith.mulf %51, %52 : vector<64x128xf32>
    %54 = arith.addf %48, %53 : vector<64x128xf32>
    %55 = vector.extract_strided_slice %9 {offsets = [0, 6], sizes = [64, 1], strides = [1, 1]} : vector<64x8xf32> to vector<64x1xf32>
    %c2_27 = arith.constant 2 : index
    %c0_28 = arith.constant 0 : index
    %56 = vector.load %arg3[%c2_27, %c0_28] : memref<3x128xf32, #tpu.memory_space<vmem>>, vector<1x128xf32>
    %57 = vector.broadcast %55 : vector<64x1xf32> to vector<64x128xf32>
    %58 = vector.broadcast %56 : vector<1x128xf32> to vector<64x128xf32>
    %59 = arith.mulf %57, %58 : vector<64x128xf32>
    %60 = arith.addf %54, %59 : vector<64x128xf32>
    %c0_29 = arith.constant 0 : index
    %c0_30 = arith.constant 0 : index
    %c0_31 = arith.constant 0 : index
    %61 = vector.load %arg5[%c0_29, %c0_30, %c0_31] : memref<6x128x128xbf16, #tpu.memory_space<vmem>>, vector<1x128x128xbf16>
    %62 = vector.shape_cast %61 : vector<1x128x128xbf16> to vector<128x128xbf16>
    %63 = arith.truncf %43 : vector<64x128xf32> to vector<64x128xbf16>
    %cst_32 = arith.constant dense<0.000000e+00> : vector<64x128xf32>
    %64 = tpu.matmul %63, %62, %cst_32 {dimension_numbers = #tpu.dot_dimension_numbers<[1], [0], [0], [1], [0, 0, 1, 1], [], []>} : vector<64x128xbf16>, vector<128x128xbf16>, vector<64x128xf32> -> vector<64x128xf32>
    %65 = arith.addf %64, %60 : vector<64x128xf32>
    %66 = vector.broadcast %2 : vector<1x128xf32> to vector<64x128xf32>
    %67 = arith.addf %65, %66 : vector<64x128xf32>
    %cst_33 = arith.constant 0.000000e+00 : f32
    %68 = vector.broadcast %cst_33 : f32 to vector<64x128xf32>
    %69 = arith.maximumf %67, %68 : vector<64x128xf32>
    %70 = vector.shape_cast %69 : vector<64x128xf32> to vector<2x4x8x128xf32>
    %cst_34 = arith.constant dense<0.000000e+00> : vector<2x8x128xf32>
    %71 = vector.multi_reduction <add>, %70, %cst_34 [1] : vector<2x4x8x128xf32> to vector<2x8x128xf32>
    %72 = vector.shape_cast %71 : vector<2x8x128xf32> to vector<16x128xf32>
    %c2_35 = arith.constant 2 : index
    %c0_36 = arith.constant 0 : index
    %c0_37 = arith.constant 0 : index
    %73 = vector.load %arg5[%c2_35, %c0_36, %c0_37] : memref<6x128x128xbf16, #tpu.memory_space<vmem>>, vector<1x128x128xbf16>
    %74 = vector.shape_cast %73 : vector<1x128x128xbf16> to vector<128x128xbf16>
    %75 = arith.truncf %72 : vector<16x128xf32> to vector<16x128xbf16>
    %cst_38 = arith.constant dense<0.000000e+00> : vector<16x128xf32>
    %76 = tpu.matmul %75, %74, %cst_38 {dimension_numbers = #tpu.dot_dimension_numbers<[1], [0], [0], [1], [0, 0, 1, 1], [], []>} : vector<16x128xbf16>, vector<128x128xbf16>, vector<16x128xf32> -> vector<16x128xf32>
    %77 = vector.shape_cast %76 : vector<16x128xf32> to vector<2x1x8x128xf32>
    %c1_39 = arith.constant 1 : index
    %c0_40 = arith.constant 0 : index
    %c0_41 = arith.constant 0 : index
    %78 = vector.load %arg5[%c1_39, %c0_40, %c0_41] : memref<6x128x128xbf16, #tpu.memory_space<vmem>>, vector<1x128x128xbf16>
    %79 = vector.shape_cast %78 : vector<1x128x128xbf16> to vector<128x128xbf16>
    %80 = arith.truncf %69 : vector<64x128xf32> to vector<64x128xbf16>
    %cst_42 = arith.constant dense<0.000000e+00> : vector<64x128xf32>
    %81 = tpu.matmul %80, %79, %cst_42 {dimension_numbers = #tpu.dot_dimension_numbers<[1], [0], [0], [1], [0, 0, 1, 1], [], []>} : vector<64x128xbf16>, vector<128x128xbf16>, vector<64x128xf32> -> vector<64x128xf32>
    %82 = vector.shape_cast %81 : vector<64x128xf32> to vector<2x4x8x128xf32>
    %83 = vector.broadcast %77 : vector<2x1x8x128xf32> to vector<2x4x8x128xf32>
    %84 = arith.addf %82, %83 : vector<2x4x8x128xf32>
    %85 = vector.shape_cast %3 : vector<1x128xf32> to vector<1x1x1x128xf32>
    %86 = vector.broadcast %85 : vector<1x1x1x128xf32> to vector<2x4x8x128xf32>
    %87 = arith.addf %84, %86 : vector<2x4x8x128xf32>
    %cst_43 = arith.constant 0.000000e+00 : f32
    %88 = vector.broadcast %cst_43 : f32 to vector<2x4x8x128xf32>
    %89 = arith.maximumf %87, %88 : vector<2x4x8x128xf32>
    %90 = vector.shape_cast %89 : vector<2x4x8x128xf32> to vector<64x128xf32>
    %c3_44 = arith.constant 3 : index
    %c0_45 = arith.constant 0 : index
    %c0_46 = arith.constant 0 : index
    %91 = vector.load %arg5[%c3_44, %c0_45, %c0_46] : memref<6x128x128xbf16, #tpu.memory_space<vmem>>, vector<1x128x128xbf16>
    %92 = vector.shape_cast %91 : vector<1x128x128xbf16> to vector<128x128xbf16>
    %93 = arith.truncf %90 : vector<64x128xf32> to vector<64x128xbf16>
    %cst_47 = arith.constant dense<0.000000e+00> : vector<64x128xf32>
    %94 = tpu.matmul %93, %92, %cst_47 {dimension_numbers = #tpu.dot_dimension_numbers<[1], [0], [0], [1], [0, 0, 1, 1], [], []>} : vector<64x128xbf16>, vector<128x128xbf16>, vector<64x128xf32> -> vector<64x128xf32>
    %95 = vector.broadcast %4 : vector<1x128xf32> to vector<64x128xf32>
    %96 = arith.addf %94, %95 : vector<64x128xf32>
    %cst_48 = arith.constant 0.000000e+00 : f32
    %97 = vector.broadcast %cst_48 : f32 to vector<64x128xf32>
    %98 = arith.maximumf %96, %97 : vector<64x128xf32>
    %99 = vector.shape_cast %98 : vector<64x128xf32> to vector<8x1024xf32>
    %c0_49 = arith.constant 0 : index
    %c0_50 = arith.constant 0 : index
    %100 = vector.load %arg6[%c0_49, %c0_50] : memref<1024x128xbf16, #tpu.memory_space<vmem>>, vector<1024x128xbf16>
    %101 = arith.truncf %99 : vector<8x1024xf32> to vector<8x1024xbf16>
    %cst_51 = arith.constant dense<0.000000e+00> : vector<8x128xf32>
    %102 = tpu.matmul %101, %100, %cst_51 {dimension_numbers = #tpu.dot_dimension_numbers<[1], [0], [0], [1], [0, 0, 1, 1], [], []>} : vector<8x1024xbf16>, vector<1024x128xbf16>, vector<8x128xf32> -> vector<8x128xf32>
    %103 = vector.broadcast %5 : vector<1x128xf32> to vector<8x128xf32>
    %104 = arith.addf %102, %103 : vector<8x128xf32>
    %cst_52 = arith.constant 0.000000e+00 : f32
    %105 = vector.broadcast %cst_52 : f32 to vector<8x128xf32>
    %106 = arith.maximumf %104, %105 : vector<8x128xf32>
    %c4_53 = arith.constant 4 : index
    %c0_54 = arith.constant 0 : index
    %c0_55 = arith.constant 0 : index
    %107 = vector.load %arg5[%c4_53, %c0_54, %c0_55] : memref<6x128x128xbf16, #tpu.memory_space<vmem>>, vector<1x128x128xbf16>
    %108 = vector.shape_cast %107 : vector<1x128x128xbf16> to vector<128x128xbf16>
    %109 = arith.truncf %106 : vector<8x128xf32> to vector<8x128xbf16>
    %cst_56 = arith.constant dense<0.000000e+00> : vector<8x128xf32>
    %110 = tpu.matmul %109, %108, %cst_56 {dimension_numbers = #tpu.dot_dimension_numbers<[1], [0], [0], [1], [0, 0, 1, 1], [], []>} : vector<8x128xbf16>, vector<128x128xbf16>, vector<8x128xf32> -> vector<8x128xf32>
    %111 = vector.broadcast %6 : vector<1x128xf32> to vector<8x128xf32>
    %112 = arith.addf %110, %111 : vector<8x128xf32>
    %cst_57 = arith.constant 0.000000e+00 : f32
    %113 = vector.broadcast %cst_57 : f32 to vector<8x128xf32>
    %114 = arith.maximumf %112, %113 : vector<8x128xf32>
    %115 = vector.shape_cast %114 : vector<8x128xf32> to vector<2x4x128xf32>
    %cst_58 = arith.constant dense<0.000000e+00> : vector<2x128xf32>
    %116 = vector.multi_reduction <add>, %115, %cst_58 [1] : vector<2x4x128xf32> to vector<2x128xf32>
    %c5_59 = arith.constant 5 : index
    %c0_60 = arith.constant 0 : index
    %c0_61 = arith.constant 0 : index
    %117 = vector.load %arg5[%c5_59, %c0_60, %c0_61] : memref<6x128x128xbf16, #tpu.memory_space<vmem>>, vector<1x128x128xbf16>
    %118 = vector.shape_cast %117 : vector<1x128x128xbf16> to vector<128x128xbf16>
    %119 = arith.truncf %116 : vector<2x128xf32> to vector<2x128xbf16>
    %cst_62 = arith.constant dense<0.000000e+00> : vector<2x128xf32>
    %120 = tpu.matmul %119, %118, %cst_62 {dimension_numbers = #tpu.dot_dimension_numbers<[1], [0], [0], [1], [0, 0, 1, 1], [], []>} : vector<2x128xbf16>, vector<128x128xbf16>, vector<2x128xf32> -> vector<2x128xf32>
    %121 = vector.broadcast %7 : vector<1x128xf32> to vector<2x128xf32>
    %122 = arith.addf %120, %121 : vector<2x128xf32>
    %cst_63 = arith.constant 0.000000e+00 : f32
    %123 = vector.broadcast %cst_63 : f32 to vector<2x128xf32>
    %124 = arith.maximumf %122, %123 : vector<2x128xf32>
    %c0_64 = arith.constant 0 : index
    %c0_65 = arith.constant 0 : index
    %125 = vector.load %arg7[%c0_64, %c0_65] : memref<128x512xbf16, #tpu.memory_space<vmem>>, vector<128x512xbf16>
    %126 = arith.truncf %124 : vector<2x128xf32> to vector<2x128xbf16>
    %cst_66 = arith.constant dense<0.000000e+00> : vector<2x512xf32>
    %127 = tpu.matmul %126, %125, %cst_66 {dimension_numbers = #tpu.dot_dimension_numbers<[1], [0], [0], [1], [0, 0, 1, 1], [], []>} : vector<2x128xbf16>, vector<128x512xbf16>, vector<2x512xf32> -> vector<2x512xf32>
    %c0_67 = arith.constant 0 : index
    %c0_68 = arith.constant 0 : index
    %128 = vector.load %arg10[%c0_67, %c0_68] : memref<1x512xf32, #tpu.memory_space<vmem>>, vector<1x512xf32>
    %129 = vector.broadcast %128 : vector<1x512xf32> to vector<2x512xf32>
    %130 = arith.addf %127, %129 : vector<2x512xf32>
    %cst_69 = arith.constant 0.000000e+00 : f32
    %131 = vector.broadcast %cst_69 : f32 to vector<2x512xf32>
    %132 = arith.maximumf %130, %131 : vector<2x512xf32>
    %c0_70 = arith.constant 0 : index
    %c0_71 = arith.constant 0 : index
    %133 = vector.load %arg8[%c0_70, %c0_71] : memref<512x128xbf16, #tpu.memory_space<vmem>>, vector<512x128xbf16>
    %134 = arith.truncf %132 : vector<2x512xf32> to vector<2x512xbf16>
    %cst_72 = arith.constant dense<0.000000e+00> : vector<2x128xf32>
    %135 = tpu.matmul %134, %133, %cst_72 {dimension_numbers = #tpu.dot_dimension_numbers<[1], [0], [0], [1], [0, 0, 1, 1], [], []>} : vector<2x512xbf16>, vector<512x128xbf16>, vector<2x128xf32> -> vector<2x128xf32>
    %136 = vector.broadcast %8 : vector<1x128xf32> to vector<2x128xf32>
    %137 = arith.addf %135, %136 : vector<2x128xf32>
    %c0_73 = arith.constant 0 : index
    %c0_74 = arith.constant 0 : index
    %138 = vector.load %arg11[%c0_73, %c0_74] : memref<2x128xf32, #tpu.memory_space<vmem>>, vector<2x128xf32>
    tpu.vector_store %arg11[%c0_73, %c0_74], %137 {strides = array<i32>} : memref<2x128xf32, #tpu.memory_space<vmem>>, vector<2x128xf32>,
    return
  }
  func.func @transform_0(%arg0: i32) -> (i32, i32) {
    %c0_i32 = arith.constant 0 : i32
    %c0_i32_0 = arith.constant 0 : i32
    return %arg0, %c0_i32 : i32, i32
  }
  func.func @transform_1(%arg0: i32) -> (i32, i32) {
    %c0_i32 = arith.constant 0 : i32
    %c0_i32_0 = arith.constant 0 : i32
    %c0_i32_1 = arith.constant 0 : i32
    return %c0_i32, %c0_i32_0 : i32, i32
  }
  func.func @transform_2(%arg0: i32) -> (i32, i32) {
    %c0_i32 = arith.constant 0 : i32
    %c0_i32_0 = arith.constant 0 : i32
    %c0_i32_1 = arith.constant 0 : i32
    return %c0_i32, %c0_i32_0 : i32, i32
  }
  func.func @transform_3(%arg0: i32) -> (i32, i32) {
    %c0_i32 = arith.constant 0 : i32
    %c0_i32_0 = arith.constant 0 : i32
    %c0_i32_1 = arith.constant 0 : i32
    return %c0_i32, %c0_i32_0 : i32, i32
  }
  func.func @transform_4(%arg0: i32) -> (i32, i32, i32) {
    %c0_i32 = arith.constant 0 : i32
    %c0_i32_0 = arith.constant 0 : i32
    %c0_i32_1 = arith.constant 0 : i32
    %c0_i32_2 = arith.constant 0 : i32
    return %c0_i32, %c0_i32_0, %c0_i32_1 : i32, i32, i32
  }
  func.func @transform_5(%arg0: i32) -> (i32, i32) {
    %c0_i32 = arith.constant 0 : i32
    %c0_i32_0 = arith.constant 0 : i32
    %c0_i32_1 = arith.constant 0 : i32
    return %c0_i32, %c0_i32_0 : i32, i32
  }
  func.func @transform_6(%arg0: i32) -> (i32, i32) {
    %c0_i32 = arith.constant 0 : i32
    %c0_i32_0 = arith.constant 0 : i32
    %c0_i32_1 = arith.constant 0 : i32
    return %c0_i32, %c0_i32_0 : i32, i32
  }
  func.func @transform_7(%arg0: i32) -> (i32, i32) {
    %c0_i32 = arith.constant 0 : i32
    %c0_i32_0 = arith.constant 0 : i32
    %c0_i32_1 = arith.constant 0 : i32
    return %c0_i32, %c0_i32_0 : i32, i32
  }
  func.func @transform_8(%arg0: i32) -> (i32, i32) {
    %c0_i32 = arith.constant 0 : i32
    %c0_i32_0 = arith.constant 0 : i32
    %c0_i32_1 = arith.constant 0 : i32
    return %c0_i32, %c0_i32_0 : i32, i32
  }
  func.func @transform_9(%arg0: i32) -> (i32, i32) {
    %c0_i32 = arith.constant 0 : i32
    %c0_i32_0 = arith.constant 0 : i32
    %c0_i32_1 = arith.constant 0 : i32
    return %c0_i32, %c0_i32_0 : i32, i32
  }
  func.func @transform_10(%arg0: i32) -> (i32, i32) {
    %c0_i32 = arith.constant 0 : i32
    %c0_i32_0 = arith.constant 0 : i32
    return %arg0, %c0_i32 : i32, i32
  }
}

</mosaic_0001>

<bundles_post_ra>
// kernel: tpu_custom_call.1
= control target key start
LH: loop header
LB: loop body
LE: loop exit
PB: predicated region body
PF: predicated region fallthrough
CT: control target
= control target key end

     0   :  { %15 = vsyncpa [#allocation3], 0  ;;  %s3963_s0 = inlined_call_operand.vmem [shape: f32[64,8], index: 0, kind: input, shape index: {}]   ;;  %s3964_s1 = inlined_call_operand.vmem [shape: f32[4,64], index: 1, kind: input, shape index: {}]   ;;  %s3965_s2 = inlined_call_operand.vmem [shape: f32[3,128], index: 2, kind: input, shape index: {}]   ;;  %s3966_s3 = inlined_call_operand.vmem [shape: bf16[64,128], index: 3, kind: input, shape index: {}]   ;;  %s3967_s4 = inlined_call_operand.hbm [shape: bf16[6,128,128], index: 4, kind: input, shape index: {}]   ;;  %s3968_s5 = inlined_call_operand.hbm [shape: bf16[1024,128], index: 5, kind: input, shape index: {}]   ;;  %s3969_s6 = inlined_call_operand.hbm [shape: bf16[128,512], index: 6, kind: input, shape index: {}]   ;;  %s3970_s7 = inlined_call_operand.hbm [shape: bf16[512,128], index: 7, kind: input, shape index: {}]   ;;  %s3971_s8 = inlined_call_operand.vmem [shape: f32[9,128], index: 8, kind: input, shape index: {}]   ;;  %s3972_s9 = inlined_call_operand.vmem [shape: f32[1,512], index: 9, kind: input, shape index: {}]   ;;  %s3973_s10 = inlined_call_operand.hbm [shape: f32[2,128], index: 10, kind: output, shape index: {}]  }
   0x1   :  { %16 = vsyncpa [#allocation6], 0 }
   0x2   :  { %17 = vsyncpa [#allocation9], 0 }
   0x3   :  { %18 = vsyncpa [#allocation4], 0  ;;  %s44_s15 = sshll.u32 %s3968_s5, 4  ;;  %s3550_s16 = smov [#allocation5]   ;;  %s45_s15 = int_to_ptr.hbm [resolvable:$true] %s44_s15 }
   0x4   :  { %s46_s17 = sshll.u32 %s3550_s16, 4  ;;  %s31_s20 = sshll.u32 %s3967_s4, 4  ;;  %s47_s17 = int_to_ptr.vmem [resolvable:$true] %s46_s17  ;;  %s32_s20 = int_to_ptr.hbm [resolvable:$true] %s31_s20 }
   0x5   :  { %s3551_s21 = smov 64   ;;  %s3552_s22 = smov 4  }
   0x6   :  { %52 = dma.hbm_to_vmem [thread:$0]  %s45_s15, 8192, %s47_s17, [#allocation6], %s3551_s21, %s3551_s21, %s3552_s22  }
   0x7   :  { %s3553_s23 = smov [#allocation2]   ;;  %s57_s27 = sshll.u32 %s3969_s6, 4  ;;  %s58_s27 = int_to_ptr.hbm [resolvable:$true] %s57_s27 }
   0x8   :  { %s33_s24 = sshll.u32 %s3553_s23, 4  ;;  %s3554_s5 = smov [#allocation7]   ;;  %s34_s24 = int_to_ptr.vmem [resolvable:$true] %s33_s24 }
   0x9   :  { %39 = dma.hbm_to_vmem [thread:$0]  %s32_s20, 6144, %s34_s24, [#allocation3], %s3551_s21, %s3551_s21, %s3552_s22  }
   0xa   :  { %s59_s28 = sshll.u32 %s3554_s5, 4  ;;  %s70_s4 = sshll.u32 %s3970_s7, 4  ;;  %s60_s28 = int_to_ptr.vmem [resolvable:$true] %s59_s28  ;;  %s71_s4 = int_to_ptr.hbm [resolvable:$true] %s70_s4 }
   0xb   :  { %s3555_s11 = smov 256   ;;  %s3556_s12 = smov 16  }
   0xc   :  { %65 = dma.hbm_to_vmem [thread:$0]  %s58_s27, 4096, %s60_s28, [#allocation6], %s3555_s11, %s3555_s11, %s3556_s12  }
   0xd   :  { %s3557_s13 = smov [#allocation8]  }
   0xe   :  { %s72_s14 = sshll.u32 %s3557_s13, 4  ;;  %s73_s14 = int_to_ptr.vmem [resolvable:$true] %s72_s14 }
   0xf   :  { %78 = dma.hbm_to_vmem [thread:$0]  %s71_s4, 4096, %s73_s14, [#allocation9], %s3551_s21, %s3551_s21, %s3552_s22  }
  0x10   :  { %3542 = dma.done.wait [#allocation3], 6144  }
  0x11   :  { %3543 = vsyncadd [#allocation3], 4294961152 }
  0x12   :  { %3544 = dma.done.wait [#allocation6], 12288  }
  0x13   :  { %3545 = vsyncadd [#allocation6], 4294955008 }
  0x14   :  { %3546 = dma.done.wait [#allocation9], 4096  }
  0x15   :  { %3547 = vsyncadd [#allocation9], 4294963200  ;;  %v3558_v0 = vmov 3   ;;  %v3559_v1 = vmov 1   ;;  %v3560_v2 = vmov 2   ;;  %v3638_v3 = vld [vmem:[%s3963_s0] sm:$0xff] }
  0x16   :  { %3361 = vset.pattern.permute.xlu0 %v3558_v0  ;;  %3359 = vset.pattern.permute.xlu1 %v3559_v1  ;;  %v3646_v4 = vld [vmem:[%s3963_s0 + $0x8] sm:$0xff]  ;;  %v3651_v5 = vld [vmem:[%s3963_s0 + $0x18] sm:$0xff]  ;;  %v3660_v6 = vld [vmem:[%s3963_s0 + $0x10] sm:$0xff]  ;;  %v3561_v7 = vmov 0   ;;  %vm371_vm0 = vcmask 523264   ;;  %vm1742_vm1 = vcmask 1043456  }
  0x17   :  { %3360 = vset.pattern.permute.xlu2 %v3560_v2  ;;  %278 = vperm.xlu0 %3361, %v3638_v3   ;;  %v3671_v8 = vld [vmem:[%s3963_s0 + $0x20] sm:$0xff]  ;;  %v3681_v9 = vld [vmem:[%s3963_s0 + $0x28] sm:$0xff]  ;;  %v3692_v10 = vld [vmem:[%s3963_s0 + $0x30] sm:$0xff]  ;;  %vm1781_vm2 = vcmask 1041409   ;;  %s3565_s17 = smov [#allocation10]   ;;  %s2427_s20 = sshll.u32 %s3973_s10, 4  ;;  %s2428_s20 = int_to_ptr.hbm [resolvable:$true] %s2427_s20 }
  0x18   :  { %178 = vperm.xlu1 %3359, %v3638_v3   ;;  %228 = vperm.xlu2 %3360, %v3638_v3   ;;  %v3700_v11 = vld [vmem:[%s3963_s0 + $0x38] sm:$0xff]  ;;  %v3165_v15 = vld [vmem:[%s3966_s3 + $0x10] sm:$0xff]  ;;  %v3164_v18 = vld [vmem:[%s3966_s3 + $0x8] sm:$0xff] }
  0x19   :  { %v3166_v13 = vld [vmem:[%s3966_s3 + $0x18] sm:$0xff]  ;;  %v3163_v19 = vld [vmem:[%s3966_s3] sm:$0xff]  ;;  %s2425_s3 = sshll.u32 %s3565_s17, 4  ;;  %s2426_s3 = int_to_ptr.vmem [resolvable:$true] %s2425_s3 }
  0x1a   :  { %388 = vmatpush.bf16.msra.mxu0 %v3166_v13  ;;  %v3735_v23 = vld [vmem:[%s3964_s1] ss:$0 sm:$0xff]  ;;  %v3745_v28 = vld [vmem:[%s3964_s1 + $0x1] ss:$0 sm:$0xff]  ;;  %v3752_v31 = vld [vmem:[%s3964_s1 + $0x2] ss:$0 sm:$0xff] }
  0x1b   :  { %v3740_v25 = vld [vmem:[%s3971_s8] ss:$0 sm:$0xff]  ;;  %v3760_v39 = vld [vmem:[%s3964_s1 + $0x3] ss:$0 sm:$0xff] }
  0x1e   :  { %389 = vmatpush.bf16.msra.mxu0 %v3165_v15 }
  0x1f   :  { %3366 = vset.pattern.permute.xlu0 %v3559_v1 }
  0x20   :  { %182 = vperm.xlu1 %3359, %v3646_v4   ;;  %190 = vperm.xlu0 %3366, %v3651_v5  }
  0x21   :  { %232 = vperm.xlu2 %3360, %v3646_v4  }
  0x22   :  { %390 = vmatpush.bf16.msra.mxu0 %v3164_v18 }
  0x26   :  { %391 = vmatpush.bf16.msra.mxu0 %v3163_v19 }
  0x28   :  { %3362 = vset.pattern.permute.xlu1 %v3558_v0  ;;  %3367 = vset.pattern.permute.xlu0 %v3561_v7 }
  0x29   :  { %282 = vperm.xlu1 %3362, %v3646_v4   ;;  %120 = vperm.xlu0 %3367, %v3638_v3  }
  0x2a   :  { %3363 = vset.pattern.permute.xlu2 %v3561_v7 }
  0x2b   :  { %130 = vperm.xlu2 %3363, %v3660_v6  }
  0x31   :  { %3364 = vset.pattern.permute.xlu1 %v3561_v7  ;;  %125 = vperm.xlu0 %3367, %v3646_v4  }
  0x32   :  { %135 = vperm.xlu1 %3364, %v3651_v5  }
  0x33   :  { %3365 = vset.pattern.permute.xlu2 %v3559_v1 }
  0x34   :  { %186 = vperm.xlu2 %3365, %v3660_v6  }
  0x39   :  { %140 = vperm.xlu0 %3367, %v3671_v8  }
  0x3a   :  { %3368 = vset.pattern.permute.xlu1 %v3560_v2 }
  0x3b   :  { %236 = vperm.xlu1 %3368, %v3660_v6  }
  0x3c   :  { %3369 = vset.pattern.permute.xlu2 %v3560_v2 }
  0x3d   :  { %240 = vperm.xlu2 %3369, %v3651_v5  }
  0x41   :  { %3376 = vset.pattern.permute.xlu0 %v3560_v2 }
  0x42   :  { %248 = vperm.xlu0 %3376, %v3681_v9  }
  0x43   :  { %3370 = vset.pattern.permute.xlu1 %v3558_v0 }
  0x44   :  { %286 = vperm.xlu1 %3370, %v3660_v6  }
  0x45   :  { %3371 = vset.pattern.permute.xlu2 %v3558_v0 }
  0x46   :  { %290 = vperm.xlu2 %3371, %v3651_v5  }
  0x4a   :  { %3381 = vset.pattern.permute.xlu0 %v3559_v1 }
  0x4b   :  { %202 = vperm.xlu0 %3381, %v3692_v10  }
  0x4c   :  { %3372 = vset.pattern.permute.xlu1 %v3561_v7 }
  0x4d   :  { %145 = vperm.xlu1 %3372, %v3681_v9  }
  0x4e   :  { %3373 = vset.pattern.permute.xlu2 %v3559_v1 }
  0x4f   :  { %194 = vperm.xlu2 %3373, %v3671_v8  }
  0x53   :  { %3386 = vset.pattern.permute.xlu0 %v3558_v0 }
  0x54   :  { %306 = vperm.xlu0 %3386, %v3700_v11  }
  0x55   :  { %3374 = vset.pattern.permute.xlu1 %v3559_v1 }
  0x56   :  { %198 = vperm.xlu1 %3374, %v3681_v9  }
  0x57   :  { %3375 = vset.pattern.permute.xlu2 %v3560_v2 }
  0x58   :  { %244 = vperm.xlu2 %3375, %v3671_v8  }
  0x5e   :  { %3377 = vset.pattern.permute.xlu1 %v3558_v0 }
  0x5f   :  { %294 = vperm.xlu1 %3377, %v3671_v8  }
  0x60   :  { %3378 = vset.pattern.permute.xlu2 %v3558_v0 }
  0x61   :  { %298 = vperm.xlu2 %3378, %v3681_v9  }
  0x67   :  { %3379 = vset.pattern.permute.xlu1 %v3561_v7 }
  0x68   :  { %150 = vperm.xlu1 %3379, %v3692_v10  }
  0x69   :  { %3380 = vset.pattern.permute.xlu2 %v3561_v7 }
  0x6a   :  { %155 = vperm.xlu2 %3380, %v3700_v11  }
  0x70   :  { %3382 = vset.pattern.permute.xlu1 %v3559_v1 }
  0x71   :  { %206 = vperm.xlu1 %3382, %v3700_v11  }
  0x72   :  { %3383 = vset.pattern.permute.xlu2 %v3560_v2  ;;  %v229_v12 = vpop.permute.xlu2 %228 }
  0x73   :  { %252 = vperm.xlu2 %3383, %v3692_v10   ;;  %v260_v37 = vmul.f32 %v3752_v31, %v229_v12 }
  0x79   :  { %3384 = vset.pattern.permute.xlu1 %v3560_v2 }
  0x7a   :  { %256 = vperm.xlu1 %3384, %v3700_v11  }
  0x7b   :  { %3385 = vset.pattern.permute.xlu2 %v3558_v0  ;;  %v233_v14 = vpop.permute.xlu2 %232 }
  0x7c   :  { %302 = vperm.xlu2 %3385, %v3692_v10   ;;  %v261_v43 = vmul.f32 %v3752_v31, %v233_v14 }
  0x85   :  { %v131_v20 = vpop.permute.xlu2 %130 }
  0x86   :  { %v161_v50 = vmul.f32 %v3735_v23, %v131_v20 }
  0x88   :  { %v170_v58 = vadd.f32 %v3740_v25, %v161_v50 }
  0x89   :  { %v279_v17 = vpop.permute.xlu0 %278 }
  0x8a   :  { %v179_v16 = vpop.permute.xlu1 %178  ;;  %v310_v44 = vmul.f32 %v3760_v39, %v279_v17 }
  0x8b   :  { %v210_v32 = vmul.f32 %v3745_v28, %v179_v16 }
  0x8e   :  { %v187_v24 = vpop.permute.xlu2 %186 }
  0x8f   :  { %v212_v59 = vmul.f32 %v3745_v28, %v187_v24 }
  0x91   :  { %v220_v0 = vadd.f32 %v212_v59, %v170_v58 }
  0x92   :  { %v183_v21 = vpop.permute.xlu1 %182  ;;  %v191_v22 = vpop.permute.xlu0 %190 }
  0x93   :  { %v211_v40 = vmul.f32 %v3745_v28, %v183_v21  ;;  %v213_v54 = vmul.f32 %v3745_v28, %v191_v22 }
  0x97   :  { %v241_v34 = vpop.permute.xlu2 %240 }
  0x98   :  { %v263_v61 = vmul.f32 %v3752_v31, %v241_v34 }
  0x9b   :  { %v283_v26 = vpop.permute.xlu1 %282  ;;  %v121_v27 = vpop.permute.xlu0 %120 }
  0x9c   :  { %v159_v29 = vmul.f32 %v3735_v23, %v121_v27  ;;  %v311_v46 = vmul.f32 %v3760_v39, %v283_v26 }
  0x9e   :  { %v168_v30 = vadd.f32 %v3740_v25, %v159_v29 }
  0xa0   :  { %v218_v33 = vadd.f32 %v210_v32, %v168_v30  ;;  %v291_v53 = vpop.permute.xlu2 %290 }
  0xa1   :  { %v313_v2 = vmul.f32 %v3760_v39, %v291_v53  ;;  %v3562_v53 = vmov 4  }
  0xa2   :  { %v268_v41 = vadd.f32 %v260_v37, %v218_v33  ;;  %3387 = vset.pattern.permute.xlu1 %v3562_v53  ;;  %3391 = vset.pattern.permute.xlu0 %v3562_v53 }
  0xa3   :  { %v126_v35 = vpop.permute.xlu0 %125  ;;  %423 = vperm.xlu1 %3387, %v3638_v3   ;;  %439 = vperm.xlu0 %3391, %v3671_v8  }
  0xa4   :  { %v136_v36 = vpop.permute.xlu1 %135  ;;  %v160_v38 = vmul.f32 %v3735_v23, %v126_v35  ;;  %v318_v49 = vadd.f32 %v310_v44, %v268_v41  ;;  %3388 = vset.pattern.permute.xlu2 %v3562_v53 }
  0xa5   :  { %v162_v48 = vmul.f32 %v3735_v23, %v136_v36  ;;  %427 = vperm.xlu2 %3388, %v3646_v4  }
  0xa6   :  { %v169_v42 = vadd.f32 %v3740_v25, %v160_v38  ;;  %v326_v56 = vmax.f32 %v318_v49, 0.0 }
  0xa7   :  { %v171_v55 = vadd.f32 %v3740_v25, %v162_v48 }
  0xa8   :  { %v219_v45 = vadd.f32 %v211_v40, %v169_v42 }
  0xa9   :  { %v221_v62 = vadd.f32 %v213_v54, %v171_v55  ;;  %v195_v14 = vpop.permute.xlu2 %194  ;;  %v3173_v54 = vld [vmem:[#allocation2 + $0x30] sm:$0xff] }
  0xaa   :  { %v269_v47 = vadd.f32 %v261_v43, %v219_v45  ;;  %v214_v33 = vmul.f32 %v3745_v28, %v195_v14 }
  0xab   :  { %v271_v7 = vadd.f32 %v263_v61, %v221_v62  ;;  %v141_v18 = vpop.permute.xlu0 %140  ;;  %v3171_v61 = vld [vmem:[#allocation2 + $0x20] sm:$0xff]  ;;  %451 = vperm.xlu0 %3391, %v3700_v11  }
  0xac   :  { %v319_v52 = vadd.f32 %v311_v46, %v269_v47  ;;  %v163_v26 = vmul.f32 %v3735_v23, %v141_v18 }
  0xad   :  { %v237_v51 = vpop.permute.xlu1 %236  ;;  %v321_v16 = vadd.f32 %v313_v2, %v271_v7 }
  0xae   :  { %v327_v57 = vmax.f32 %v319_v52, 0.0  ;;  %v262_v63 = vmul.f32 %v3752_v31, %v237_v51  ;;  %v172_v34 = vadd.f32 %v3740_v25, %v163_v26  ;;  %v3174_v51 = vld [vmem:[#allocation2 + $0x38] sm:$0xff] }
  0xaf   :  { %v329_v20 = vmax.f32 %v321_v16, 0.0  ;;  %631 = vmatpush.bf16.msra.mxu1 %v3174_v51 }
  0xb0   :  { %v342_v60 = vpack.c.bf16 %v327_v57, %v326_v56  ;;  %v270_v12 = vadd.f32 %v262_v63, %v220_v0  ;;  %v222_v38 = vadd.f32 %v214_v33, %v172_v34  ;;  %v3172_v56 = vld [vmem:[#allocation2 + $0x28] sm:$0xff] }
  0xb2   :  { %2455 = vmatmul.msk.bf16.vlgmr.msra.gmra.mxu0 %vm371_vm0, %v342_v60  ;;  %v245_v22 = vpop.permute.xlu2 %244  ;;  %v3563_v60 = vmov 5  }
  0xb3   :  { %v264_v40 = vmul.f32 %v3752_v31, %v245_v22  ;;  %632 = vmatpush.bf16.msra.mxu1 %v3173_v54  ;;  %3389 = vset.pattern.permute.xlu1 %v3563_v60 }
  0xb4   :  { %v249_v27 = vpop.permute.xlu0 %248  ;;  %465 = vperm.xlu1 %3389, %v3638_v3   ;;  %3390 = vset.pattern.permute.xlu2 %v3563_v60 }
  0xb5   :  { %v265_v36 = vmul.f32 %v3752_v31, %v249_v27  ;;  %v272_v44 = vadd.f32 %v264_v40, %v222_v38  ;;  %469 = vperm.xlu2 %3390, %v3646_v4   ;;  %v3168_v27 = vld [vmem:[#allocation2 + $0x8] sm:$0xff] }
  0xb6   :  { %v287_v1 = vpop.permute.xlu1 %286 }
  0xb7   :  { %v312_v13 = vmul.f32 %v3760_v39, %v287_v1  ;;  %633 = vmatpush.bf16.msra.mxu1 %v3172_v56 }
  0xb9   :  { %v320_v15 = vadd.f32 %v312_v13, %v270_v12 }
  0xbb   :  { %v328_v17 = vmax.f32 %v320_v15, 0.0  ;;  %v299_v35 = vpop.permute.xlu2 %298  ;;  %634 = vmatpush.bf16.msra.mxu1 %v3171_v61 }
  0xbc   :  { %v315_v41 = vmul.f32 %v3760_v39, %v299_v35  ;;  %3392 = vset.pattern.permute.xlu1 %v3562_v53 }
  0xbd   :  { %v343_v21 = vpack.c.bf16 %v329_v20, %v328_v17  ;;  %v203_v59 = vpop.permute.xlu0 %202  ;;  %443 = vperm.xlu1 %3392, %v3681_v9   ;;  %481 = vperm.xlu2 %3390, %v3671_v8  }
  0xbe   :  { %v216_v63 = vmul.f32 %v3745_v28, %v203_v59 }
  0xbf   :  { %v146_v19 = vpop.permute.xlu1 %145 }
  0xc0   :  { %v164_v24 = vmul.f32 %v3735_v23, %v146_v19 }
  0xc2   :  { %2456 = vmatmul.msk.bf16.gmra.mxu0 %vm371_vm0, %v343_v21  ;;  %v173_v30 = vadd.f32 %v3740_v25, %v164_v24 }
  0xc4   :  { %v156_v47 = vpop.permute.xlu2 %155 }
  0xc5   :  { %v166_v1 = vmul.f32 %v3735_v23, %v156_v47  ;;  %3393 = vset.pattern.permute.xlu1 %v3563_v60 }
  0xc6   :  { %v307_v14 = vpop.permute.xlu0 %306  ;;  %485 = vperm.xlu1 %3393, %v3681_v9  }
  0xc7   :  { %v175_v15 = vadd.f32 %v3740_v25, %v166_v1  ;;  %v317_v20 = vmul.f32 %v3760_v39, %v307_v14 }
  0xc8   :  { %v199_v29 = vpop.permute.xlu1 %198 }
  0xc9   :  { %v215_v32 = vmul.f32 %v3745_v28, %v199_v29  ;;  %v3167_v29 = vld [vmem:[#allocation2] sm:$0xff] }
  0xcb   :  { %v223_v37 = vadd.f32 %v215_v32, %v173_v30  ;;  %v3564_v30 = vmov 6  }
  0xcc   :  { %3401 = vset.pattern.permute.xlu0 %v3564_v30  ;;  %3394 = vset.pattern.permute.xlu2 %v3564_v30 }
  0xcd   :  { %v273_v42 = vadd.f32 %v265_v36, %v223_v37  ;;  %v253_v57 = vpop.permute.xlu2 %252  ;;  %519 = vperm.xlu0 %3401, %v3646_v4   ;;  %515 = vperm.xlu2 %3394, %v3638_v3  }
  0xce   :  { %v266_v2 = vmul.f32 %v3752_v31, %v253_v57  ;;  %3395 = vset.pattern.permute.xlu1 %v3562_v53 }
  0xcf   :  { %v323_v45 = vadd.f32 %v315_v41, %v273_v42  ;;  %431 = vperm.xlu1 %3395, %v3660_v6  }
  0xd1   :  { %v295_v43 = vpop.permute.xlu1 %294  ;;  %v331_v49 = vmax.f32 %v323_v45, 0.0 }
  0xd2   :  { %v314_v46 = vmul.f32 %v3760_v39, %v295_v43 }
  0xd4   :  { %v322_v48 = vadd.f32 %v314_v46, %v272_v44 }
  0xd5   :  { %531 = vperm.xlu0 %3401, %v3671_v8   ;;  %3396 = vset.pattern.permute.xlu2 %v3562_v53 }
  0xd6   :  { %v330_v50 = vmax.f32 %v322_v48, 0.0  ;;  %v303_v12 = vpop.permute.xlu2 %302  ;;  %447 = vperm.xlu2 %3396, %v3692_v10  }
  0xd7   :  { %v316_v17 = vmul.f32 %v3760_v39, %v303_v12  ;;  %3397 = vset.pattern.permute.xlu1 %v3563_v60  ;;  %v3169_v39 = vld [vmem:[#allocation2 + $0x10] sm:$0xff] }
  0xd8   :  { %v344_v52 = vpack.c.bf16 %v331_v49, %v330_v50  ;;  %473 = vperm.xlu1 %3397, %v3660_v6   ;;  %v3190_v49 = vld [vmem:[#allocation2 + $0x78] sm:$0xff]  ;;  %v3189_v50 = vld [vmem:[#allocation2 + $0x70] sm:$0xff] }
  0xd9   :  { %832 = vmatpush.bf16.msra.mxu3 %v3190_v49 }
  0xda   :  { %v151_v55 = vpop.permute.xlu1 %150  ;;  %2457 = vmatmul.msk.bf16.gmra.mxu0 %vm371_vm0, %v344_v52 }
  0xdb   :  { %v165_v58 = vmul.f32 %v3735_v23, %v151_v55 }
  0xdd   :  { %v174_v62 = vadd.f32 %v3740_v25, %v165_v58  ;;  %527 = vperm.xlu0 %3401, %v3651_v5   ;;  %833 = vmatpush.bf16.msra.mxu3 %v3189_v50 }
  0xde   :  { %3398 = vset.pattern.permute.xlu2 %v3563_v60 }
  0xdf   :  { %v224_v7 = vadd.f32 %v216_v63, %v174_v62  ;;  %489 = vperm.xlu2 %3398, %v3692_v10  }
  0xe0   :  { %3399 = vset.pattern.permute.xlu1 %v3564_v30 }
  0xe1   :  { %v274_v16 = vadd.f32 %v266_v2, %v224_v7  ;;  %535 = vperm.xlu1 %3399, %v3681_v9   ;;  %v3411_v9 = vld [vmem:[%s3971_s8 + $0x1] ss:$0 sm:$0xff]  ;;  %v3185_v7 = vld [vmem:[#allocation2 + $0x50] sm:$0xff] }
  0xe3   :  { %v207_v0 = vpop.permute.xlu1 %206  ;;  %v324_v21 = vadd.f32 %v316_v17, %v274_v16  ;;  %v3183_v16 = vld [vmem:[#allocation2 + $0x40] sm:$0xff] }
  0xe4   :  { %v217_v13 = vmul.f32 %v3745_v28, %v207_v0  ;;  %v3186_v0 = vld [vmem:[#allocation2 + $0x58] sm:$0xff] }
  0xe5   :  { %v332_v24 = vmax.f32 %v324_v21, 0.0 }
  0xe6   :  { %v225_v19 = vadd.f32 %v217_v13, %v175_v15  ;;  %v3184_v13 = vld [vmem:[#allocation2 + $0x48] sm:$0xff] }
  0xe7   :  { %3400 = vset.pattern.permute.xlu2 %v3562_v53  ;;  %v3187_v53 = vld [vmem:[#allocation2 + $0x60] sm:$0xff] }
  0xe8   :  { %435 = vperm.xlu2 %3400, %v3651_v5  }
  0xe9   :  { %3402 = vset.pattern.permute.xlu1 %v3563_v60 }
  0xea   :  { %477 = vperm.xlu1 %3402, %v3651_v5  }
  0xec   :  { %v257_v18 = vpop.permute.xlu1 %256 }
  0xed   :  { %v267_v23 = vmul.f32 %v3752_v31, %v257_v18  ;;  %v3170_v31 = vld [vmem:[#allocation2 + $0x18] sm:$0xff] }
  0xee   :  { %635 = vmatpush.bf16.msra.mxu1 %v3170_v31 }
  0xef   :  { %v275_v28 = vadd.f32 %v267_v23, %v225_v19  ;;  %v3859_v23 = vld [vmem:[%s3965_s2] ss:$0 sm:$0xff] }
  0xf0   :  { %3403 = vset.pattern.permute.xlu2 %v3563_v60 }
  0xf1   :  { %v325_v22 = vadd.f32 %v317_v20, %v275_v28  ;;  %493 = vperm.xlu2 %3403, %v3700_v11   ;;  %v3864_v20 = vld [vmem:[%s3965_s2 + $0x1] ss:$0 sm:$0xff] }
  0xf2   :  { %636 = vmatpush.bf16.msra.mxu1 %v3169_v39  ;;  %3404 = vset.pattern.permute.xlu1 %v3564_v30 }
  0xf3   :  { %v333_v26 = vmax.f32 %v325_v22, 0.0  ;;  %523 = vperm.xlu1 %3404, %v3660_v6   ;;  %v3871_v22 = vld [vmem:[%s3965_s2 + $0x2] ss:$0 sm:$0xff] }
  0xf5   :  { %v345_v25 = vpack.c.bf16 %v333_v26, %v332_v24 }
  0xf6   :  { %637 = vmatpush.bf16.msra.mxu1 %v3168_v27 }
  0xf7   :  { %2458 = vmatmul.msk.bf16.gmra.mxu0 %vm371_vm0, %v345_v25 }
  0xf9   :  { %3405 = vset.pattern.permute.xlu2 %v3564_v30 }
  0xfa   :  { %638 = vmatpush.bf16.msra.mxu1 %v3167_v29  ;;  %539 = vperm.xlu2 %3405, %v3692_v10  }
  0xfb   :  { %543 = vperm.xlu1 %3404, %v3700_v11   ;;  %v3188_v11 = vld [vmem:[#allocation2 + $0x68] sm:$0xff] }
  0xfc   :  { %834 = vmatpush.bf16.msra.mxu3 %v3188_v11 }
  0xff   :  { %v428_v61 = vpop.permute.xlu2 %427 }
 0x100   :  { %835 = vmatpush.bf16.msra.mxu3 %v3187_v53  ;;  %v456_v25 = vmul.f32 %v3859_v23, %v428_v61 }
 0x104   :  { %836 = vmatpush.bf16.msra.mxu3 %v3186_v0 }
 0x108   :  { %837 = vmatpush.bf16.msra.mxu3 %v3185_v7 }
 0x10c   :  { %838 = vmatpush.bf16.msra.mxu3 %v3184_v13 }
 0x10f   :  { %v470_v63 = vpop.permute.xlu2 %469 }
 0x110   :  { %839 = vmatpush.bf16.msra.mxu3 %v3183_v16  ;;  %v498_v31 = vmul.f32 %v3864_v20, %v470_v63  ;;  %v3180_v63 = vld [vmem:[#allocation2 + $0xa8] sm:$0xff] }
 0x115   :  { %v424_v52 = vpop.permute.xlu1 %423  ;;  %v3848_v12 = vpop.permute.xlu0 %439 }
 0x116   :  { %v455_v21 = vmul.f32 %v3859_v23, %v424_v52  ;;  %v459_v13 = vmul.f32 %v3859_v23, %v3848_v12 }
 0x117   :  { %v3846_v2 = vpop.permute.xlu2 %481 }
 0x11d   :  { %v3850_v17 = vpop.permute.xlu0 %451 }
 0x126   :  { %v466_v58 = vpop.permute.xlu1 %465 }
 0x127   :  { %v516_v15 = vpop.permute.xlu2 %515  ;;  %v497_v28 = vmul.f32 %v3864_v20, %v466_v58 }
 0x128   :  { %v547_v39 = vmul.f32 %v3871_v22, %v516_v15  ;;  %v3179_v15 = vld [vmem:[#allocation2 + $0xa0] sm:$0xff] }
 0x129   :  { %v505_v26 = vadd.f32 %v497_v28, %v455_v21 }
 0x12f   :  { %v393_v32 = vpop.f32.mrf.mxu0  ;;  %v3842_v60 = vpop.permute.xlu1 %443 }
 0x130   :  { %v394_v3 = vadd.f32 %v3411_v9, %v393_v32  ;;  %v3854_v19 = vpop.permute.xlu2 %447  ;;  %v506_v32 = vadd.f32 %v498_v31, %v456_v25  ;;  %v460_v16 = vmul.f32 %v3859_v23, %v3842_v60 }
 0x132   :  { %v413_v33 = vmax.f32 %v394_v3, 0.0 }
 0x137   :  { %v395_v4 = vpop.f32.mrf.mxu0 }
 0x138   :  { %v396_v8 = vadd.f32 %v3411_v9, %v395_v4  ;;  %v3844_v62 = vpop.permute.xlu1 %485 }
 0x139   :  { %v3876_v30 = vpop.permute.xlu2 %489  ;;  %v502_v21 = vmul.f32 %v3864_v20, %v3844_v62 }
 0x13a   :  { %v414_v34 = vmax.f32 %v396_v8, 0.0  ;;  %v3882_v8 = vld [vmem:[%s3971_s8 + $0x2] ss:$0 sm:$0xff] }
 0x13b   :  { %v510_v31 = vadd.f32 %v502_v21, %v460_v16 }
 0x13c   :  { %v579_v35 = vpack.c.bf16 %v414_v34, %v413_v33 }
 0x13e   :  { %639 = vmatmul.bf16.vlgmr.msra.gmra.mxu1 %v579_v35 }
 0x13f   :  { %v398_v36 = vpop.f32.mrf.mxu0  ;;  %v520_v24 = vpop.permute.xlu0 %519 }
 0x140   :  { %v399_v37 = vadd.f32 %v3411_v9, %v398_v36  ;;  %v548_v3 = vmul.f32 %v3871_v22, %v520_v24 }
 0x141   :  { %v432_v1 = vpop.permute.xlu1 %431 }
 0x142   :  { %v415_v40 = vmax.f32 %v399_v37, 0.0  ;;  %v556_v34 = vadd.f32 %v548_v3, %v506_v32  ;;  %v457_v35 = vmul.f32 %v3859_v23, %v432_v1  ;;  %v3176_v32 = vld [vmem:[#allocation2 + $0x88] sm:$0xff]  ;;  %v3175_v3 = vld [vmem:[#allocation2 + $0x80] sm:$0xff] }
 0x147   :  { %v400_v6 = vpop.f32.mrf.mxu0  ;;  %v532_v33 = vpop.permute.xlu0 %531 }
 0x148   :  { %v401_v38 = vadd.f32 %v3411_v9, %v400_v6  ;;  %v551_v24 = vmul.f32 %v3871_v22, %v532_v33 }
 0x14a   :  { %v416_v41 = vmax.f32 %v401_v38, 0.0  ;;  %v474_v14 = vpop.permute.xlu1 %473 }
 0x14b   :  { %v499_v36 = vmul.f32 %v3864_v20, %v474_v14  ;;  %v501_v14 = vmul.f32 %v3864_v20, %v3846_v2  ;;  %v3177_v2 = vld [vmem:[#allocation2 + $0x90] sm:$0xff] }
 0x14c   :  { %v580_v42 = vpack.c.bf16 %v416_v41, %v415_v40  ;;  %v436_v41 = vpop.permute.xlu2 %435 }
 0x14d   :  { %v509_v28 = vadd.f32 %v501_v14, %v459_v13 }
 0x14e   :  { %644 = vmatmul.bf16.gmra.mxu1 %v580_v42 }
 0x153   :  { %v3852_v18 = vpop.permute.xlu1 %535 }
 0x154   :  { %v552_v12 = vmul.f32 %v3871_v22, %v3852_v18  ;;  %v461_v18 = vmul.f32 %v3859_v23, %v3854_v19 }
 0x157   :  { %v403_v43 = vpop.f32.mrf.mxu0 }
 0x158   :  { %v404_v44 = vadd.f32 %v3411_v9, %v403_v43  ;;  %v507_v43 = vadd.f32 %v499_v36, %v457_v35 }
 0x15a   :  { %v417_v47 = vmax.f32 %v404_v44, 0.0 }
 0x15c   :  { %v478_v27 = vpop.permute.xlu1 %477 }
 0x15d   :  { %v500_v44 = vmul.f32 %v3864_v20, %v478_v27 }
 0x15f   :  { %v405_v45 = vpop.f32.mrf.mxu0 }
 0x160   :  { %v406_v46 = vadd.f32 %v3411_v9, %v405_v45 }
 0x162   :  { %v418_v5 = vmax.f32 %v406_v46, 0.0 }
 0x164   :  { %v581_v48 = vpack.c.bf16 %v418_v5, %v417_v47  ;;  %v458_v5 = vmul.f32 %v3859_v23, %v436_v41  ;;  %v462_v41 = vmul.f32 %v3859_v23, %v3850_v17 }
 0x165   :  { %v524_v40 = vpop.permute.xlu1 %523 }
 0x166   :  { %649 = vmatmul.bf16.gmra.mxu1 %v581_v48  ;;  %v549_v47 = vmul.f32 %v3871_v22, %v524_v40  ;;  %v528_v48 = vpop.permute.xlu0 %527  ;;  %v508_v52 = vadd.f32 %v500_v44, %v458_v5 }
 0x167   :  { %v550_v53 = vmul.f32 %v3871_v22, %v528_v48 }
 0x16d   :  { %v544_v44 = vpop.permute.xlu1 %543 }
 0x16e   :  { %v554_v5 = vmul.f32 %v3871_v22, %v544_v44 }
 0x174   :  { %v408_v51 = vpop.f32.mrf.mxu0 }
 0x175   :  { %v409_v54 = vadd.f32 %v3411_v9, %v408_v51  ;;  %v557_v51 = vadd.f32 %v549_v47, %v507_v43 }
 0x177   :  { %v419_v56 = vmax.f32 %v409_v54, 0.0 }
 0x17c   :  { %v410_v10 = vpop.f32.mrf.mxu0 }
 0x17d   :  { %v411_v55 = vadd.f32 %v3411_v9, %v410_v10  ;;  %v555_v9 = vadd.f32 %v547_v39, %v505_v26  ;;  %v558_v10 = vadd.f32 %v550_v53, %v508_v52  ;;  %v3178_v26 = vld [vmem:[#allocation2 + $0x98] sm:$0xff]  ;;  %v559_v39 = vadd.f32 %v551_v24, %v509_v28 }
 0x17f   :  { %v420_v57 = vmax.f32 %v411_v55, 0.0  ;;  %v3182_v55 = vld [vmem:[#allocation2 + $0xb8] sm:$0xff] }
 0x180   :  { %749 = vmatpush.bf16.msra.mxu2 %v3182_v55 }
 0x181   :  { %v582_v59 = vpack.c.bf16 %v420_v57, %v419_v56  ;;  %v3181_v57 = vld [vmem:[#allocation2 + $0xb0] sm:$0xff] }
 0x183   :  { %654 = vmatmul.bf16.gmra.mxu1 %v582_v59 }
 0x184   :  { %750 = vmatpush.bf16.msra.mxu2 %v3181_v57  ;;  %v3196_v57 = vld [vmem:[#allocation2 + $0xe8] sm:$0xff] }
 0x188   :  { %751 = vmatpush.bf16.msra.mxu2 %v3180_v63 }
 0x18c   :  { %752 = vmatpush.bf16.msra.mxu2 %v3179_v15 }
 0x190   :  { %753 = vmatpush.bf16.msra.mxu2 %v3178_v26 }
 0x194   :  { %754 = vmatpush.bf16.msra.mxu2 %v3177_v2 }
 0x198   :  { %755 = vmatpush.bf16.msra.mxu2 %v3176_v32 }
 0x19c   :  { %756 = vmatpush.bf16.msra.mxu2 %v3175_v3 }
 0x1bb   :  { %v640_v29 = vpop.f32.mrf.mxu1 }
 0x1bc   :  { %v641_v4 = vadd.f32 %v640_v29, %v555_v9  ;;  %v560_v29 = vadd.f32 %v552_v12, %v510_v31 }
 0x1be   :  { %v661_v6 = vadd.f32 %v3882_v8, %v641_v4  ;;  %v494_v4 = vpop.permute.xlu2 %493 }
 0x1c0   :  { %v669_v45 = vmax.f32 %v661_v6, 0.0 }
 0x1c3   :  { %v642_v37 = vpop.f32.mrf.mxu1 }
 0x1c4   :  { %v643_v38 = vadd.f32 %v642_v37, %v556_v34  ;;  %v503_v37 = vmul.f32 %v3864_v20, %v3876_v30 }
 0x1c6   :  { %v662_v42 = vadd.f32 %v3882_v8, %v643_v38  ;;  %v540_v6 = vpop.permute.xlu2 %539  ;;  %v511_v38 = vadd.f32 %v503_v37, %v461_v18 }
 0x1c7   :  { %v553_v40 = vmul.f32 %v3871_v22, %v540_v6  ;;  %v3198_v22 = vld [vmem:[#allocation2 + $0xf8] sm:$0xff] }
 0x1c8   :  { %v670_v46 = vmax.f32 %v662_v42, 0.0  ;;  %v504_v42 = vmul.f32 %v3864_v20, %v494_v4  ;;  %956 = vmatpush.bf16.msrb.mxu2 %v3198_v22  ;;  %v3200_v22 = vld [vmem:[#allocation5 + $0x8] sm:$0xff] }
 0x1c9   :  { %v561_v43 = vadd.f32 %v553_v40, %v511_v38 }
 0x1ca   :  { %v3891_v49 = vadd.f32 %v670_v46, %v669_v45  ;;  %v780_v50 = vpack.c.bf16 %v670_v46, %v669_v45  ;;  %v512_v47 = vadd.f32 %v504_v42, %v462_v41 }
 0x1cb   :  { %v645_v11 = vpop.f32.mrf.mxu1 }
 0x1cc   :  { %840 = vmatmul.bf16.vlgmr.msra.gmra.mxu3 %v780_v50  ;;  %v646_v54 = vadd.f32 %v645_v11, %v557_v51  ;;  %v562_v11 = vadd.f32 %v554_v5, %v512_v47  ;;  %v3205_v47 = vld [vmem:[#allocation5 + $0x30] sm:$0xff]  ;;  %v3222_v5 = vld [vmem:[#allocation5 + $0xb8] sm:$0xff] }
 0x1cd   :  { %1579 = vmatpush.bf16.msrb.mxu3 %v3222_v5 }
 0x1ce   :  { %v3895_v58 = vadd.f32 %v3882_v8, %v646_v54 }
 0x1d0   :  { %v671_v0 = vmax.f32 %v3895_v58, 0.0  ;;  %v3195_v58 = vld [vmem:[#allocation2 + $0xe0] sm:$0xff] }
 0x1d2   :  { %v678_v17 = vadd.f32 %v3891_v49, %v671_v0  ;;  %v3192_v49 = vld [vmem:[#allocation2 + $0xc8] sm:$0xff] }
 0x1d3   :  { %v647_v56 = vpop.f32.mrf.mxu1 }
 0x1d4   :  { %v648_v59 = vadd.f32 %v647_v56, %v558_v10  ;;  %v3197_v56 = vld [vmem:[#allocation2 + $0xf0] sm:$0xff] }
 0x1d5   :  { %957 = vmatpush.bf16.msrb.mxu2 %v3197_v56  ;;  %v3245_v56 = vld [vmem:[#allocation5 + $0x170] sm:$0xff] }
 0x1d6   :  { %v3898_v61 = vadd.f32 %v3882_v8, %v648_v59  ;;  %v3194_v59 = vld [vmem:[#allocation2 + $0xd8] sm:$0xff] }
 0x1d8   :  { %v672_v1 = vmax.f32 %v3898_v61, 0.0  ;;  %v3191_v61 = vld [vmem:[#allocation2 + $0xc0] sm:$0xff] }
 0x1d9   :  { %958 = vmatpush.bf16.msrb.mxu2 %v3196_v57  ;;  %v3211_v57 = vld [vmem:[#allocation5 + $0x60] sm:$0xff] }
 0x1da   :  { %v781_v7 = vpack.c.bf16 %v672_v1, %v671_v0  ;;  %v679_v54 = vadd.f32 %v678_v17, %v672_v1  ;;  %v3220_v17 = vld [vmem:[#allocation5 + $0xa8] sm:$0xff] }
 0x1dc   :  { %845 = vmatmul.bf16.gmra.mxu3 %v781_v7  ;;  %v3416_v7 = vld [vmem:[%s3971_s8 + $0x3] ss:$0 sm:$0xff] }
 0x1dd   :  { %959 = vmatpush.bf16.msrb.mxu2 %v3195_v58  ;;  %v3219_v58 = vld [vmem:[#allocation5 + $0xa0] sm:$0xff] }
 0x1e1   :  { %960 = vmatpush.bf16.msrb.mxu2 %v3194_v59 }
 0x1e3   :  { %v650_v25 = vpop.f32.mrf.mxu1 }
 0x1e4   :  { %v651_v27 = vadd.f32 %v650_v25, %v559_v39 }
 0x1e6   :  { %v665_v9 = vadd.f32 %v3882_v8, %v651_v27 }
 0x1e8   :  { %v673_v34 = vmax.f32 %v665_v9, 0.0 }
 0x1eb   :  { %v652_v60 = vpop.f32.mrf.mxu1 }
 0x1ec   :  { %v653_v62 = vadd.f32 %v652_v60, %v560_v29 }
 0x1ee   :  { %v666_v33 = vadd.f32 %v3882_v8, %v653_v62 }
 0x1f0   :  { %v674_v35 = vmax.f32 %v666_v33, 0.0 }
 0x1f2   :  { %v782_v36 = vpack.c.bf16 %v674_v35, %v673_v34  ;;  %v680_v48 = vadd.f32 %v674_v35, %v673_v34 }
 0x1f4   :  { %850 = vmatmul.bf16.gmra.mxu3 %v782_v36 }
 0x200   :  { %v655_v45 = vpop.f32.mrf.mxu1 }
 0x201   :  { %v656_v46 = vadd.f32 %v655_v45, %v561_v43 }
 0x203   :  { %v667_v19 = vadd.f32 %v3882_v8, %v656_v46  ;;  %v3206_v46 = vld [vmem:[#allocation5 + $0x38] sm:$0xff] }
 0x204   :  { %1553 = vmatpush.bf16.msrb.mxu0 %v3206_v46  ;;  %v3234_v46 = vld [vmem:[#allocation5 + $0x118] sm:$0xff] }
 0x205   :  { %v675_v30 = vmax.f32 %v667_v19, 0.0  ;;  %v3204_v19 = vld [vmem:[#allocation5 + $0x28] sm:$0xff] }
 0x207   :  { %v681_v50 = vadd.f32 %v680_v48, %v675_v30  ;;  %v3214_v48 = vld [vmem:[#allocation5 + $0x78] sm:$0xff] }
 0x208   :  { %v657_v51 = vpop.f32.mrf.mxu1  ;;  %1554 = vmatpush.bf16.msrb.mxu0 %v3205_v47  ;;  %1566 = vmatpush.bf16.msrb.mxu1 %v3214_v48  ;;  %v3250_v47 = vld [vmem:[#allocation5 + $0x198] sm:$0xff]  ;;  %v3233_v48 = vld [vmem:[#allocation5 + $0x110] sm:$0xff] }
 0x209   :  { %v658_v52 = vadd.f32 %v657_v51, %v562_v11  ;;  %v3933_v11 = vld [vmem:[%s3971_s8 + $0x4] ss:$0 sm:$0xff] }
 0x20a   :  { %v3202_v51 = vld [vmem:[#allocation5 + $0x18] sm:$0xff] }
 0x20b   :  { %v668_v53 = vadd.f32 %v3882_v8, %v658_v52  ;;  %v3193_v8 = vld [vmem:[#allocation2 + $0xd0] sm:$0xff] }
 0x20c   :  { %961 = vmatpush.bf16.msrb.mxu2 %v3193_v8  ;;  %1555 = vmatpush.bf16.msrb.mxu0 %v3204_v19  ;;  %v3213_v52 = vld [vmem:[#allocation5 + $0x70] sm:$0xff]  ;;  %v3199_v8 = vld [vmem:[#allocation5] sm:$0xff] }
 0x20d   :  { %v676_v23 = vmax.f32 %v668_v53, 0.0  ;;  %v3246_v53 = vld [vmem:[#allocation5 + $0x178] sm:$0xff]  ;;  %1567 = vmatpush.bf16.msrb.mxu1 %v3213_v52  ;;  %v3248_v52 = vld [vmem:[#allocation5 + $0x188] sm:$0xff] }
 0x20f   :  { %v783_v20 = vpack.c.bf16 %v676_v23, %v675_v30  ;;  %v682_v10 = vadd.f32 %v681_v50, %v676_v23  ;;  %v3221_v30 = vld [vmem:[#allocation5 + $0xb0] sm:$0xff]  ;;  %v3203_v50 = vld [vmem:[#allocation5 + $0x20] sm:$0xff] }
 0x210   :  { %962 = vmatpush.bf16.msrb.mxu2 %v3192_v49  ;;  %1580 = vmatpush.bf16.msrb.mxu3 %v3221_v30  ;;  %v3249_v30 = vld [vmem:[#allocation5 + $0x190] sm:$0xff] }
 0x211   :  { %855 = vmatmul.bf16.gmra.mxu3 %v783_v20  ;;  %v700_v55 = vpack.c.bf16 %v682_v10, %v679_v54  ;;  %1556 = vmatpush.bf16.msrb.mxu0 %v3203_v50  ;;  %v3201_v20 = vld [vmem:[#allocation5 + $0x10] sm:$0xff]  ;;  %v3212_v10 = vld [vmem:[#allocation5 + $0x68] sm:$0xff] }
 0x212   :  { %1568 = vmatpush.bf16.msrb.mxu1 %v3212_v10 }
 0x213   :  { %757 = vmatmul.bf16.vlgmr.msra.gmra.mxu2 %v700_v55 }
 0x214   :  { %963 = vmatpush.bf16.msrb.mxu2 %v3191_v61  ;;  %1581 = vmatpush.bf16.msrb.mxu3 %v3220_v17  ;;  %v3210_v61 = vld [vmem:[#allocation5 + $0x58] sm:$0xff] }
 0x215   :  { %1557 = vmatpush.bf16.msrb.mxu0 %v3202_v51  ;;  %v3232_v51 = vld [vmem:[#allocation5 + $0x108] sm:$0xff] }
 0x216   :  { %1569 = vmatpush.bf16.msrb.mxu1 %v3211_v57 }
 0x218   :  { %1618 = vmatpush.bf16.msra.mxu2 %v3246_v53  ;;  %1582 = vmatpush.bf16.msrb.mxu3 %v3219_v58 }
 0x219   :  { %1558 = vmatpush.bf16.msrb.mxu0 %v3201_v20  ;;  %v3247_v20 = vld [vmem:[#allocation5 + $0x180] sm:$0xff] }
 0x21a   :  { %1570 = vmatpush.bf16.msrb.mxu1 %v3210_v61 }
 0x21c   :  { %1619 = vmatpush.bf16.msra.mxu2 %v3245_v56 }
 0x21d   :  { %1559 = vmatpush.bf16.msrb.mxu0 %v3200_v22 }
 0x221   :  { %1560 = vmatpush.bf16.msrb.mxu0 %v3199_v8 }
 0x24f   :  { %v841_v63 = vpop.f32.mrf.mxu3 }
 0x257   :  { %v843_v0 = vpop.f32.mrf.mxu3 }
 0x25f   :  { %v846_v1 = vpop.f32.mrf.mxu3 }
 0x267   :  { %v848_v26 = vpop.f32.mrf.mxu3 }
 0x277   :  { %v851_v39 = vpop.f32.mrf.mxu3 }
 0x27f   :  { %v853_v9 = vpop.f32.mrf.mxu3 }
 0x294   :  { %v856_v35 = vpop.f32.mrf.mxu3 }
 0x296   :  { %v758_v13 = vpop.f32.mrf.mxu2 }
 0x297   :  { %v861_v14 = vadd.f32 %v841_v63, %v758_v13  ;;  %v862_v15 = vadd.f32 %v843_v0, %v758_v13  ;;  %v863_v31 = vadd.f32 %v846_v1, %v758_v13  ;;  %v864_v12 = vadd.f32 %v848_v26, %v758_v13  ;;  %v3218_v63 = vld [vmem:[#allocation5 + $0x98] sm:$0xff]  ;;  %v3209_v13 = vld [vmem:[#allocation5 + $0x50] sm:$0xff]  ;;  %v3228_v26 = vld [vmem:[#allocation5 + $0xe8] sm:$0xff] }
 0x298   :  { %v3230_v0 = vld [vmem:[#allocation5 + $0xf8] sm:$0xff]  ;;  %1583 = vmatpush.bf16.msrb.mxu3 %v3218_v63  ;;  %1571 = vmatpush.bf16.msrb.mxu1 %v3209_v13 }
 0x299   :  { %v870_v16 = vadd.f32 %v3416_v7, %v861_v14  ;;  %v871_v21 = vadd.f32 %v3416_v7, %v862_v15  ;;  %v872_v2 = vadd.f32 %v3416_v7, %v863_v31  ;;  %v873_v27 = vadd.f32 %v3416_v7, %v864_v12  ;;  %1592 = vmatpush.bf16.msra.mxu0 %v3230_v0  ;;  %v3217_v14 = vld [vmem:[#allocation5 + $0x90] sm:$0xff]  ;;  %v3207_v12 = vld [vmem:[#allocation5 + $0x40] sm:$0xff]  ;;  %v3262_v63 = vld [vmem:[#allocation5 + $0x1f8] sm:$0xff] }
 0x29a   :  { %v3229_v15 = vld [vmem:[#allocation5 + $0xf0] sm:$0xff] }
 0x29b   :  { %v878_v28 = vmax.f32 %v870_v16, 0.0  ;;  %v879_v24 = vmax.f32 %v871_v21, 0.0  ;;  %v880_v29 = vmax.f32 %v872_v2, 0.0  ;;  %v881_v32 = vmax.f32 %v873_v27, 0.0  ;;  %v3227_v2 = vld [vmem:[#allocation5 + $0xe0] sm:$0xff]  ;;  %v3238_v27 = vld [vmem:[#allocation5 + $0x138] sm:$0xff] }
 0x29c   :  { %v858_v6 = vpop.f32.mrf.mxu3  ;;  %1584 = vmatpush.bf16.msrb.mxu3 %v3217_v14 }
 0x29d   :  { %v903_v25 = vpack.c.bf16 %v879_v24, %v878_v28  ;;  %v904_v60 = vpack.c.bf16 %v881_v32, %v880_v29  ;;  %1593 = vmatpush.bf16.msra.mxu0 %v3229_v15  ;;  %v3208_v28 = vld [vmem:[#allocation5 + $0x48] sm:$0xff]  ;;  %v3242_v29 = vld [vmem:[#allocation5 + $0x158] sm:$0xff] }
 0x29e   :  { %v760_v62 = vpop.f32.mrf.mxu2  ;;  %v3216_v24 = vld [vmem:[#allocation5 + $0x88] sm:$0xff]  ;;  %1572 = vmatpush.bf16.msrb.mxu1 %v3208_v28  ;;  %v3254_v32 = vld [vmem:[#allocation5 + $0x1b8] sm:$0xff] }
 0x29f   :  { %964 = vmatmul.bf16.vlgmr.msrb.gmra.mxu2 %v903_v25  ;;  %v865_v3 = vadd.f32 %v851_v39, %v760_v62  ;;  %v866_v4 = vadd.f32 %v853_v9, %v760_v62  ;;  %v867_v38 = vadd.f32 %v856_v35, %v760_v62  ;;  %v868_v40 = vadd.f32 %v858_v6, %v760_v62  ;;  %v3243_v25 = vld [vmem:[#allocation5 + $0x160] sm:$0xff]  ;;  %v3226_v62 = vld [vmem:[#allocation5 + $0xd8] sm:$0xff]  ;;  %v3225_v35 = vld [vmem:[#allocation5 + $0xd0] sm:$0xff] }
 0x2a0   :  { %1585 = vmatpush.bf16.msrb.mxu3 %v3216_v24  ;;  %v3215_v39 = vld [vmem:[#allocation5 + $0x80] sm:$0xff]  ;;  %v3258_v28 = vld [vmem:[#allocation5 + $0x1d8] sm:$0xff] }
 0x2a1   :  { %v874_v33 = vadd.f32 %v3416_v7, %v865_v3  ;;  %v875_v34 = vadd.f32 %v3416_v7, %v866_v4  ;;  %v876_v41 = vadd.f32 %v3416_v7, %v867_v38  ;;  %v877_v42 = vadd.f32 %v3416_v7, %v868_v40  ;;  %v3244_v7 = vld [vmem:[#allocation5 + $0x168] sm:$0xff]  ;;  %1594 = vmatpush.bf16.msra.mxu0 %v3228_v26  ;;  %v3237_v3 = vld [vmem:[#allocation5 + $0x130] sm:$0xff] }
 0x2a2   :  { %1620 = vmatpush.bf16.msra.mxu2 %v3244_v7  ;;  %1573 = vmatpush.bf16.msrb.mxu1 %v3207_v12  ;;  %v3241_v4 = vld [vmem:[#allocation5 + $0x150] sm:$0xff]  ;;  %v3224_v38 = vld [vmem:[#allocation5 + $0xc8] sm:$0xff] }
 0x2a3   :  { %v882_v36 = vmax.f32 %v874_v33, 0.0  ;;  %v883_v18 = vmax.f32 %v875_v34, 0.0  ;;  %v884_v43 = vmax.f32 %v876_v41, 0.0  ;;  %v885_v44 = vmax.f32 %v877_v42, 0.0  ;;  %v3253_v33 = vld [vmem:[#allocation5 + $0x1b0] sm:$0xff]  ;;  %v3235_v41 = vld [vmem:[#allocation5 + $0x120] sm:$0xff] }
 0x2a4   :  { %1586 = vmatpush.bf16.msrb.mxu3 %v3215_v39  ;;  %v3239_v42 = vld [vmem:[#allocation5 + $0x140] sm:$0xff]  ;;  %v3260_v7 = vld [vmem:[#allocation5 + $0x1e8] sm:$0xff]  ;;  %v3257_v26 = vld [vmem:[#allocation5 + $0x1d0] sm:$0xff] }
 0x2a5   :  { %v905_v37 = vpack.c.bf16 %v883_v18, %v882_v36  ;;  %v906_v45 = vpack.c.bf16 %v885_v44, %v884_v43  ;;  %1595 = vmatpush.bf16.msra.mxu0 %v3227_v2  ;;  %v3236_v36 = vld [vmem:[#allocation5 + $0x128] sm:$0xff]  ;;  %v3251_v43 = vld [vmem:[#allocation5 + $0x1a0] sm:$0xff]  ;;  %v3270_v2 = vld [vmem:[#allocation2 + $0x138] sm:$0xff] }
 0x2a6   :  { %1621 = vmatpush.bf16.msra.mxu2 %v3243_v25  ;;  %1605 = vmatpush.bf16.msra.mxu1 %v3238_v27  ;;  %v3240_v18 = vld [vmem:[#allocation5 + $0x148] sm:$0xff]  ;;  %v3269_v27 = vld [vmem:[#allocation2 + $0x130] sm:$0xff] }
 0x2a7   :  { %v3256_v25 = vld [vmem:[#allocation5 + $0x1c8] sm:$0xff] }
 0x2a8   :  { %1631 = vmatpush.bf16.msra.mxu3 %v3254_v32  ;;  %v3267_v32 = vld [vmem:[#allocation2 + $0x120] sm:$0xff] }
 0x2a9   :  { %1596 = vmatpush.bf16.msra.mxu0 %v3226_v62 }
 0x2aa   :  { %1622 = vmatpush.bf16.msra.mxu2 %v3242_v29  ;;  %1606 = vmatpush.bf16.msra.mxu1 %v3237_v3  ;;  %v3268_v29 = vld [vmem:[#allocation2 + $0x128] sm:$0xff] }
 0x2ac   :  { %1632 = vmatpush.bf16.msra.mxu3 %v3253_v33  ;;  %v3263_v33 = vld [vmem:[#allocation2 + $0x100] sm:$0xff] }
 0x2ad   :  { %1597 = vmatpush.bf16.msra.mxu0 %v3225_v35 }
 0x2ae   :  { %1623 = vmatpush.bf16.msra.mxu2 %v3241_v4  ;;  %1607 = vmatpush.bf16.msra.mxu1 %v3236_v36  ;;  %v3264_v4 = vld [vmem:[#allocation2 + $0x108] sm:$0xff]  ;;  %v3418_v36 = vld [vmem:[%s3971_s8 + $0x5] ss:$0 sm:$0xff] }
 0x2af   :  { %969 = vmatmul.bf16.gmra.mxu2 %v904_v60 }
 0x2b1   :  { %1598 = vmatpush.bf16.msra.mxu0 %v3224_v38 }
 0x2b2   :  { %1624 = vmatpush.bf16.msra.mxu2 %v3240_v18  ;;  %1608 = vmatpush.bf16.msra.mxu1 %v3235_v41 }
 0x2b6   :  { %1625 = vmatpush.bf16.msra.mxu2 %v3239_v42  ;;  %1609 = vmatpush.bf16.msra.mxu1 %v3234_v46 }
 0x2ba   :  { %1610 = vmatpush.bf16.msra.mxu1 %v3233_v48 }
 0x2be   :  { %1611 = vmatpush.bf16.msra.mxu1 %v3232_v51 }
 0x2bf   :  { %974 = vmatmul.bf16.gmra.mxu2 %v905_v37  ;;  %v3252_v37 = vld [vmem:[#allocation5 + $0x1a8] sm:$0xff] }
 0x2c0   :  { %1633 = vmatpush.bf16.msra.mxu3 %v3252_v37 }
 0x2c4   :  { %1634 = vmatpush.bf16.msra.mxu3 %v3251_v43 }
 0x2c8   :  { %1635 = vmatpush.bf16.msra.mxu3 %v3250_v47 }
 0x2cc   :  { %1636 = vmatpush.bf16.msra.mxu3 %v3249_v30 }
 0x2cf   :  { %979 = vmatmul.bf16.gmra.mxu2 %v906_v45  ;;  %v3223_v45 = vld [vmem:[#allocation5 + $0xc0] sm:$0xff] }
 0x2d0   :  { %1599 = vmatpush.bf16.msra.mxu0 %v3223_v45  ;;  %1637 = vmatpush.bf16.msra.mxu3 %v3248_v52 }
 0x2d4   :  { %1638 = vmatpush.bf16.msra.mxu3 %v3247_v20 }
 0x322   :  { %v965_v23 = vpop.f32.mrf.mxu2 }
 0x323   :  { %v966_v54 = vadd.f32 %v3933_v11, %v965_v23  ;;  %v3231_v23 = vld [vmem:[#allocation5 + $0x100] sm:$0xff] }
 0x324   :  { %1612 = vmatpush.bf16.msra.mxu1 %v3231_v23 }
 0x325   :  { %v985_v55 = vmax.f32 %v966_v54, 0.0 }
 0x327   :  { %1129 = vst [vmem:[#allocation1] ss:$9 sm:$0xff] %v985_v55 }
 0x32a   :  { %v967_v59 = vpop.f32.mrf.mxu2 }
 0x32b   :  { %v968_v49 = vadd.f32 %v3933_v11, %v967_v59 }
 0x32d   :  { %v986_v1 = vmax.f32 %v968_v49, 0.0 }
 0x32f   :  { %1131 = vst [vmem:[#allocation1 + $0x1] ss:$9 sm:$0xff] %v986_v1  ;;  %v3261_v1 = vld [vmem:[#allocation5 + $0x1f0] sm:$0xff] }
 0x332   :  { %v970_v16 = vpop.f32.mrf.mxu2 }
 0x333   :  { %v971_v21 = vadd.f32 %v3933_v11, %v970_v16 }
 0x335   :  { %v987_v31 = vmax.f32 %v971_v21, 0.0 }
 0x337   :  { %1133 = vst [vmem:[#allocation1 + $0x2] ss:$9 sm:$0xff] %v987_v31  ;;  %v3255_v31 = vld [vmem:[#allocation5 + $0x1c0] sm:$0xff] }
 0x33a   :  { %v972_v60 = vpop.f32.mrf.mxu2 }
 0x33b   :  { %v973_v9 = vadd.f32 %v3933_v11, %v972_v60  ;;  %v3266_v60 = vld [vmem:[#allocation2 + $0x118] sm:$0xff] }
 0x33d   :  { %v988_v34 = vmax.f32 %v973_v9, 0.0  ;;  %v3265_v9 = vld [vmem:[#allocation2 + $0x110] sm:$0xff] }
 0x33f   :  { %1135 = vst [vmem:[#allocation1 + $0x3] ss:$9 sm:$0xff] %v988_v34 }
 0x342   :  { %v975_v6 = vpop.f32.mrf.mxu2 }
 0x343   :  { %v976_v40 = vadd.f32 %v3933_v11, %v975_v6  ;;  %v3278_v6 = vld [vmem:[#allocation2 + $0x178] sm:$0xff] }
 0x344   :  { %1833 = vmatpush.bf16.msrb.mxu2 %v3278_v6 }
 0x345   :  { %v989_v44 = vmax.f32 %v976_v40, 0.0 }
 0x347   :  { %1137 = vst [vmem:[#allocation1 + $0x4] ss:$9 sm:$0xff] %v989_v44 }
 0x34a   :  { %v977_v5 = vpop.f32.mrf.mxu2 }
 0x34b   :  { %v978_v19 = vadd.f32 %v3933_v11, %v977_v5 }
 0x34d   :  { %v990_v50 = vmax.f32 %v978_v19, 0.0 }
 0x34f   :  { %1139 = vst [vmem:[#allocation1 + $0x5] ss:$9 sm:$0xff] %v990_v50 }
 0x352   :  { %v980_v53 = vpop.f32.mrf.mxu2 }
 0x353   :  { %v981_v17 = vadd.f32 %v3933_v11, %v980_v53 }
 0x355   :  { %v991_v54 = vmax.f32 %v981_v17, 0.0 }
 0x357   :  { %1141 = vst [vmem:[#allocation1 + $0x6] ss:$9 sm:$0xff] %v991_v54  ;;  %v3277_v54 = vld [vmem:[#allocation2 + $0x170] sm:$0xff] }
 0x358   :  { %1834 = vmatpush.bf16.msrb.mxu2 %v3277_v54  ;;  %v3291_v54 = vld [vmem:[#allocation7 + $0x64] sm:$0xf] }
 0x35a   :  { %v982_v10 = vpop.f32.mrf.mxu2 }
 0x35b   :  { %v983_v55 = vadd.f32 %v3933_v11, %v982_v10  ;;  %v3259_v11 = vld [vmem:[#allocation5 + $0x1e0] sm:$0xff]  ;;  %v3276_v10 = vld [vmem:[#allocation2 + $0x168] sm:$0xff] }
 0x35c   :  { %1835 = vmatpush.bf16.msrb.mxu2 %v3276_v10 }
 0x35d   :  { %v992_v22 = vmax.f32 %v983_v55, 0.0  ;;  %v3275_v55 = vld [vmem:[#allocation2 + $0x160] sm:$0xff] }
 0x35f   :  { %1143 = vst [vmem:[#allocation1 + $0x7] ss:$9 sm:$0xff] %v992_v22  ;;  %v3274_v22 = vld [vmem:[#allocation2 + $0x158] sm:$0xff] }
 0x360   :  { %1836 = vmatpush.bf16.msrb.mxu2 %v3275_v55 }
 0x364   :  { %1837 = vmatpush.bf16.msrb.mxu2 %v3274_v22 }
 0x366   :  { %v1144_v56 = vld [vmem:[#allocation1] sm:$0xff]  ;;  %v1145_v57 = vld [vmem:[#allocation1 + $0x9] sm:$0xff]  ;;  %v1146_v58 = vld [vmem:[#allocation1 + $0x12] sm:$0xff] }
 0x367   :  { %v1160_v59 = vpack.c.bf16 %v1144_v56, %v1144_v56  ;;  %v1161_v8 = vpack.c.bf16 %v1145_v57, %v1145_v57  ;;  %v1162_v49 = vpack.c.bf16 %v1146_v58, %v1146_v58  ;;  %v1149_v61 = vld [vmem:[#allocation1 + $0x2d] sm:$0xff]  ;;  %v1147_v13 = vld [vmem:[#allocation1 + $0x1b] sm:$0xff]  ;;  %v1148_v14 = vld [vmem:[#allocation1 + $0x24] sm:$0xff] }
 0x368   :  { %v1165_v0 = vpack.c.bf16 %v1149_v61, %v1149_v61  ;;  %v1150_v15 = vld [vmem:[#allocation1 + $0x36] sm:$0xff]  ;;  %v1163_v16 = vpack.c.bf16 %v1147_v13, %v1147_v13  ;;  %v1164_v21 = vpack.c.bf16 %v1148_v14, %v1148_v14  ;;  %v1151_v12 = vld [vmem:[#allocation1 + $0x3f] sm:$0xff]  ;;  %v3271_v58 = vld [vmem:[#allocation2 + $0x140] sm:$0xff] }
 0x369   :  { %1561 = vmatmul.bf16.vlgmr.msrb.gmra.mxu0 %v1160_v59  ;;  %1574 = vmatmul.bf16.vlgmr.msrb.gmra.mxu1 %v1161_v8  ;;  %v1166_v24 = vpack.c.bf16 %v1150_v15, %v1150_v15  ;;  %v1167_v39 = vpack.c.bf16 %v1151_v12, %v1151_v12  ;;  %v3273_v56 = vld [vmem:[#allocation2 + $0x150] sm:$0xff]  ;;  %v3272_v57 = vld [vmem:[#allocation2 + $0x148] sm:$0xff]  ;;  %v3419_v59 = vld [vmem:[%s3971_s8 + $0x6] ss:$0 sm:$0xff] }
 0x36a   :  { %1587 = vmatmul.bf16.vlgmr.msrb.gmra.mxu3 %v1162_v49  ;;  %1626 = vmatmul.bf16.vlgmr.msra.gmra.mxu2 %v1165_v0  ;;  %v3021_v8 = vld [vmem:[#allocation7 + $0xe0] sm:$0xf]  ;;  %v3309_v49 = vld [vmem:[#allocation7 + $0xec] sm:$0xf0]  ;;  %v3307_v61 = vld [vmem:[#allocation7 + $0xe4] sm:$0xf] }
 0x36b   :  { %1644 = vmatpush.bf16.msrb.mxu0 %v3262_v63  ;;  %1725 = vmatpush.bf16.msrb.mxu1 %v3270_v2  ;;  %v3022_v63 = vor.u32 %v3309_v49, %v3021_v8  ;;  %v3023_v0 = vld [vmem:[#allocation7 + $0xf0] sm:$0xf0]  ;;  %v3308_v14 = vld [vmem:[#allocation7 + $0xec] sm:$0xf]  ;;  %v3031_v15 = vld [vmem:[#allocation7 + $0xf8] sm:$0xf0] }
 0x36c   :  { %1838 = vmatpush.bf16.msrb.mxu2 %v3273_v56  ;;  %v3013_v12 = vld [vmem:[#allocation7 + $0xc8] sm:$0xf]  ;;  %v3304_v2 = vld [vmem:[#allocation7 + $0xcc] sm:$0xf]  ;;  %v2967_v49 = vld [vmem:[#allocation7 + $0x78] sm:$0xf0] }
 0x36d   :  { %2050 = vmatpush.bf16.msrb.mxu3 %v3022_v63  ;;  %v3292_v8 = vld [vmem:[#allocation7 + $0x6c] sm:$0xf] }
 0x36f   :  { %1645 = vmatpush.bf16.msrb.mxu0 %v3261_v1  ;;  %1726 = vmatpush.bf16.msrb.mxu1 %v3269_v27  ;;  %v3029_v1 = vld [vmem:[#allocation7 + $0xe8] sm:$0xf] }
 0x370   :  { %1839 = vmatpush.bf16.msrb.mxu2 %v3272_v57  ;;  %v2959_v57 = vld [vmem:[#allocation7 + $0x70] sm:$0xf0] }
 0x373   :  { %1646 = vmatpush.bf16.msrb.mxu0 %v3260_v7  ;;  %1727 = vmatpush.bf16.msrb.mxu1 %v3268_v29  ;;  %v3310_v7 = vld [vmem:[#allocation7 + $0xf4] sm:$0xf0] }
 0x374   :  { %1840 = vmatpush.bf16.msrb.mxu2 %v3271_v58  ;;  %v3030_v13 = vor.u32 %v3310_v7, %v3029_v1  ;;  %v2965_v58 = vld [vmem:[#allocation7 + $0x68] sm:$0xf]  ;;  %v2941_v1 = vld [vmem:[#allocation7 + $0x40] sm:$0xf]  ;;  %v2962_v7 = vor.u32 %v3291_v54, %v2959_v57  ;;  %v3325_v57 = vld [vmem:[#allocation8 + $0x70] sm:$0xff] }
 0x377   :  { %1647 = vmatpush.bf16.msrb.mxu0 %v3259_v11  ;;  %1728 = vmatpush.bf16.msrb.mxu1 %v3267_v32  ;;  %v3026_v11 = vor.u32 %v3307_v61, %v3023_v0  ;;  %v3015_v32 = vld [vmem:[#allocation7 + $0xd8] sm:$0xf0] }
 0x379   :  { %1600 = vmatmul.bf16.vlgmr.msra.gmra.mxu0 %v1163_v16  ;;  %1613 = vmatmul.bf16.vlgmr.msra.gmra.mxu1 %v1164_v21  ;;  %v3005_v16 = vld [vmem:[#allocation7 + $0xc0] sm:$0xf]  ;;  %v3034_v21 = vor.u32 %v3308_v14, %v3031_v15  ;;  %v3287_v14 = vld [vmem:[#allocation7 + $0x44] sm:$0xf]  ;;  %v2943_v15 = vld [vmem:[#allocation7 + $0x50] sm:$0xf0] }
 0x37a   :  { %1639 = vmatmul.bf16.vlgmr.msra.gmra.mxu3 %v1166_v24  ;;  %v3303_v24 = vld [vmem:[#allocation7 + $0xc4] sm:$0xf] }
 0x37b   :  { %1648 = vmatpush.bf16.msrb.mxu0 %v3258_v28  ;;  %1729 = vmatpush.bf16.msrb.mxu1 %v3266_v60  ;;  %v3305_v28 = vld [vmem:[#allocation7 + $0xcc] sm:$0xf0]  ;;  %v2989_v60 = vld [vmem:[#allocation7 + $0xa0] sm:$0xf] }
 0x37c   :  { %2089 = vmatpush.bf16.msra.mxu2 %v3034_v21 }
 0x37f   :  { %1649 = vmatpush.bf16.msrb.mxu0 %v3257_v26  ;;  %1730 = vmatpush.bf16.msrb.mxu1 %v3265_v9  ;;  %v3007_v26 = vld [vmem:[#allocation7 + $0xd0] sm:$0xf0]  ;;  %v3301_v9 = vld [vmem:[#allocation7 + $0xac] sm:$0xf0] }
 0x383   :  { %1650 = vmatpush.bf16.msrb.mxu0 %v3256_v25  ;;  %1731 = vmatpush.bf16.msrb.mxu1 %v3264_v4  ;;  %v3006_v25 = vor.u32 %v3305_v28, %v3005_v16  ;;  %v3299_v4 = vld [vmem:[#allocation7 + $0xa4] sm:$0xf]  ;;  %v2970_v28 = vor.u32 %v3292_v8, %v2967_v49  ;;  %v3341_v8 = vld [vmem:[#allocation8 + $0xf0] sm:$0xff]  ;;  %v3324_v49 = vld [vmem:[#allocation8 + $0x68] sm:$0xff] }
 0x385   :  { %2051 = vmatpush.bf16.msrb.mxu3 %v3006_v25  ;;  %v3288_v25 = vld [vmem:[#allocation7 + $0x4c] sm:$0xf] }
 0x387   :  { %1651 = vmatpush.bf16.msrb.mxu0 %v3255_v31  ;;  %1732 = vmatpush.bf16.msrb.mxu1 %v3263_v33  ;;  %v3010_v31 = vor.u32 %v3303_v24, %v3007_v26  ;;  %v2991_v33 = vld [vmem:[#allocation7 + $0xb0] sm:$0xf0]  ;;  %v2949_v24 = vld [vmem:[#allocation7 + $0x48] sm:$0xf]  ;;  %v3290_v26 = vld [vmem:[#allocation7 + $0x54] sm:$0xf0] }
 0x38a   :  { %1652 = vmatmul.bf16.vlgmr.msrb.gmra.mxu0 %v1167_v39  ;;  %v3306_v39 = vld [vmem:[#allocation7 + $0xd4] sm:$0xf0] }
 0x38b   :  { %2063 = vmatpush.bf16.msra.mxu0 %v3026_v11  ;;  %2076 = vmatpush.bf16.msra.mxu1 %v3030_v13  ;;  %v3014_v29 = vor.u32 %v3306_v39, %v3013_v12  ;;  %v3289_v13 = vld [vmem:[#allocation7 + $0x4c] sm:$0xf0] }
 0x38f   :  { %2064 = vmatpush.bf16.msra.mxu0 %v3010_v31  ;;  %2077 = vmatpush.bf16.msra.mxu1 %v3014_v29  ;;  %v2951_v31 = vld [vmem:[#allocation7 + $0x58] sm:$0xf0]  ;;  %v2950_v29 = vor.u32 %v3290_v26, %v2949_v24  ;;  %v3329_v24 = vld [vmem:[#allocation8 + $0x90] sm:$0xff] }
 0x390   :  { %v3420_v26 = vld [vmem:[%s3971_s8 + $0x7] ss:$0 sm:$0xff] }
 0x3e6   :  { %v1562_v62 = vpop.f32.mrf.mxu0  ;;  %v1575_v3 = vpop.f32.mrf.mxu1 }
 0x3e7   :  { %v1563_v38 = vadd.f32 %v3418_v36, %v1562_v62  ;;  %v3302_v36 = vld [vmem:[#allocation7 + $0xb4] sm:$0xf0] }
 0x3e9   :  { %v1576_v42 = vadd.f32 %v1575_v3, %v1563_v38  ;;  %v3018_v3 = vor.u32 %v3304_v2, %v3015_v32  ;;  %v2994_v38 = vor.u32 %v3299_v4, %v2991_v33  ;;  %v2942_v2 = vor.u32 %v3289_v13, %v2941_v1  ;;  %v3323_v1 = vld [vmem:[#allocation8 + $0x60] sm:$0xff] }
 0x3ea   :  { %v3339_v13 = vld [vmem:[#allocation8 + $0xe0] sm:$0xff] }
 0x3eb   :  { %2090 = vmatpush.bf16.msra.mxu2 %v3018_v3  ;;  %2065 = vmatpush.bf16.msra.mxu0 %v2994_v38 }
 0x3ed   :  { %v1588_v34 = vpop.f32.mrf.mxu3  ;;  %v1627_v35 = vpop.f32.mrf.mxu2 }
 0x3ee   :  { %v1564_v18 = vpop.f32.mrf.mxu0  ;;  %v1577_v37 = vpop.f32.mrf.mxu1  ;;  %v1589_v45 = vadd.f32 %v1588_v34, %v1576_v42  ;;  %v2997_v34 = vld [vmem:[#allocation7 + $0xa8] sm:$0xf]  ;;  %v3297_v42 = vld [vmem:[#allocation7 + $0x8c] sm:$0xf0] }
 0x3ef   :  { %v3300_v18 = vld [vmem:[#allocation7 + $0xac] sm:$0xf]  ;;  %v2999_v37 = vld [vmem:[#allocation7 + $0xb8] sm:$0xf0] }
 0x3f5   :  { %v1590_v40 = vpop.f32.mrf.mxu3  ;;  %v1629_v41 = vpop.f32.mrf.mxu2 }
 0x3f6   :  { %v1601_v43 = vpop.f32.mrf.mxu0  ;;  %v1614_v44 = vpop.f32.mrf.mxu1  ;;  %v2998_v40 = vor.u32 %v3302_v36, %v2997_v34  ;;  %v2973_v41 = vld [vmem:[#allocation7 + $0x80] sm:$0xf] }
 0x3f7   :  { %v1602_v46 = vadd.f32 %v1601_v43, %v1589_v45  ;;  %v3002_v43 = vor.u32 %v3300_v18, %v2999_v37  ;;  %v2975_v45 = vld [vmem:[#allocation7 + $0x90] sm:$0xf0]  ;;  %v2925_v18 = vld [vmem:[#allocation7 + $0x20] sm:$0xf]  ;;  %v3285_v37 = vld [vmem:[#allocation7 + $0x2c] sm:$0xf0] }
 0x3f8   :  { %2078 = vmatpush.bf16.msra.mxu1 %v2998_v40  ;;  %v2926_v38 = vor.u32 %v3285_v37, %v2925_v18  ;;  %v2927_v40 = vld [vmem:[#allocation7 + $0x30] sm:$0xf0] }
 0x3f9   :  { %v1615_v5 = vadd.f32 %v1614_v44, %v1602_v46  ;;  %v3295_v44 = vld [vmem:[#allocation7 + $0x84] sm:$0xf]  ;;  %v2981_v46 = vld [vmem:[#allocation7 + $0x88] sm:$0xf]  ;;  %2091 = vmatpush.bf16.msra.mxu2 %v3002_v43 }
 0x3fb   :  { %v1628_v30 = vadd.f32 %v1627_v35, %v1615_v5  ;;  %v2990_v35 = vor.u32 %v3301_v9, %v2989_v60  ;;  %v2954_v9 = vor.u32 %v3288_v25, %v2951_v31 }
 0x3fd   :  { %v1640_v47 = vpop.f32.mrf.mxu3  ;;  %2052 = vmatpush.bf16.msrb.mxu3 %v2990_v35 }
 0x3fe   :  { %v1603_v19 = vpop.f32.mrf.mxu0  ;;  %v1616_v48 = vpop.f32.mrf.mxu1  ;;  %v1641_v51 = vadd.f32 %v1640_v47, %v1628_v30 }
 0x3ff   :  { %v3298_v19 = vld [vmem:[#allocation7 + $0x94] sm:$0xf0]  ;;  %v3296_v48 = vld [vmem:[#allocation7 + $0x8c] sm:$0xf] }
 0x405   :  { %v1642_v50 = vpop.f32.mrf.mxu3 }
 0x406   :  { %v2974_v50 = vor.u32 %v3297_v42, %v2973_v41  ;;  %v2933_v41 = vld [vmem:[#allocation7 + $0x28] sm:$0xf]  ;;  %v3286_v42 = vld [vmem:[#allocation7 + $0x34] sm:$0xf0] }
 0x407   :  { %v1653_v52 = vpop.f32.mrf.mxu0 }
 0x408   :  { %v1654_v53 = vadd.f32 %v1653_v52, %v1641_v51  ;;  %v2983_v51 = vld [vmem:[#allocation7 + $0x98] sm:$0xf0]  ;;  %v2957_v52 = vld [vmem:[#allocation7 + $0x60] sm:$0xf]  ;;  %2053 = vmatpush.bf16.msrb.mxu3 %v2974_v50  ;;  %v2911_v50 = vld [vmem:[#allocation7 + $0x10] sm:$0xf0] }
 0x409   :  { %v2986_v56 = vor.u32 %v3296_v48, %v2983_v51  ;;  %v3279_v48 = vld [vmem:[#allocation7 + $0x4] sm:$0xf]  ;;  %v2917_v51 = vld [vmem:[#allocation7 + $0x8] sm:$0xf] }
 0x40a   :  { %v1657_v17 = vmax.f32 %v1654_v53, 0.0 }
 0x40b   :  { %2092 = vmatpush.bf16.msra.mxu2 %v2986_v56  ;;  %v3342_v56 = vld [vmem:[#allocation8 + $0xf8] sm:$0xff] }
 0x40c   :  { %v1675_v23 = vpack.c.bf16 %v1657_v17, %v1657_v17  ;;  %v2978_v17 = vor.u32 %v3295_v44, %v2975_v45  ;;  %v2934_v44 = vor.u32 %v3286_v42, %v2933_v41  ;;  %v3284_v45 = vld [vmem:[#allocation7 + $0x2c] sm:$0xf] }
 0x40e   :  { %1733 = vmatmul.bf16.vlgmr.msrb.gmra.mxu1 %v1675_v23  ;;  %v2982_v23 = vor.u32 %v3298_v19, %v2981_v46  ;;  %2066 = vmatpush.bf16.msra.mxu0 %v2978_v17  ;;  %v2935_v46 = vld [vmem:[#allocation7 + $0x38] sm:$0xf0]  ;;  %v3281_v19 = vld [vmem:[#allocation7 + $0xc] sm:$0xf0] }
 0x40f   :  { %v1655_v20 = vpop.f32.mrf.mxu0  ;;  %2093 = vmatpush.bf16.msra.mxu2 %v2970_v28  ;;  %v3321_v28 = vld [vmem:[#allocation8 + $0x50] sm:$0xff] }
 0x410   :  { %v3293_v20 = vld [vmem:[#allocation7 + $0x6c] sm:$0xf0]  ;;  %2079 = vmatpush.bf16.msra.mxu1 %v2982_v23  ;;  %v3280_v23 = vld [vmem:[#allocation7 + $0xc] sm:$0xf] }
 0x411   :  { %v2958_v0 = vor.u32 %v3293_v20, %v2957_v52  ;;  %v3282_v52 = vld [vmem:[#allocation7 + $0x14] sm:$0xf0]  ;;  %v2919_v20 = vld [vmem:[#allocation7 + $0x18] sm:$0xf0] }
 0x412   :  { %2067 = vmatpush.bf16.msra.mxu0 %v2962_v7  ;;  %v2918_v17 = vor.u32 %v3282_v52, %v2917_v51  ;;  %v2922_v54 = vor.u32 %v3280_v23, %v2919_v20  ;;  %v3331_v7 = vld [vmem:[#allocation8 + $0xa0] sm:$0xff] }
 0x413   :  { %2054 = vmatpush.bf16.msrb.mxu3 %v2958_v0  ;;  %2094 = vmatpush.bf16.msra.mxu2 %v2954_v9  ;;  %v3340_v0 = vld [vmem:[#allocation8 + $0xe8] sm:$0xff]  ;;  %v3319_v9 = vld [vmem:[#allocation8 + $0x40] sm:$0xff] }
 0x417   :  { %2055 = vmatpush.bf16.msrb.mxu3 %v2942_v2 }
 0x41b   :  { %2056 = vmatpush.bf16.msrb.mxu3 %v2926_v38 }
 0x48b   :  { %v1734_v27 = vpop.f32.mrf.mxu1 }
 0x48c   :  { %v1735_v62 = vadd.f32 %v3419_v59, %v1734_v27  ;;  %v3294_v59 = vld [vmem:[#allocation7 + $0x74] sm:$0xf0]  ;;  %v2946_v27 = vor.u32 %v3287_v14, %v2943_v15 }
 0x48d   :  { %v2966_v11 = vor.u32 %v3294_v59, %v2965_v58  ;;  %v3333_v58 = vld [vmem:[#allocation8 + $0xb0] sm:$0xff]  ;;  %v3322_v14 = vld [vmem:[#allocation8 + $0x58] sm:$0xff] }
 0x48e   :  { %v1738_v6 = vmax.f32 %v1735_v62, 0.0  ;;  %2068 = vmatpush.bf16.msra.mxu0 %v2946_v27  ;;  %v3317_v59 = vld [vmem:[#allocation8 + $0x30] sm:$0xff]  ;;  %v3330_v15 = vld [vmem:[#allocation8 + $0x98] sm:$0xff]  ;;  %v3320_v27 = vld [vmem:[#allocation8 + $0x48] sm:$0xff] }
 0x48f   :  { %2080 = vmatpush.bf16.msra.mxu1 %v2966_v11  ;;  %v3315_v11 = vld [vmem:[#allocation8 + $0x20] sm:$0xff] }
 0x490   :  { %v1740_v47 = vrot.slane %v1738_v6, 4  ;;  %v1743_v5 = vsel %vm1742_vm1, %v1738_v6, 0.0  ;;  %v3283_v6 = vld [vmem:[#allocation7 + $0x24] sm:$0xf] }
 0x491   :  { %v1744_v30 = vrot.slane %v1743_v5, 4  ;;  %v2930_v43 = vor.u32 %v3283_v6, %v2927_v40 }
 0x492   :  { %v1750_v53 = vsel %vm1742_vm1, %v1740_v47, 0.0  ;;  %v2938_v47 = vor.u32 %v3284_v45, %v2935_v46 }
 0x493   :  { %v1745_v10 = vadd.f32 %v1744_v30, %v1743_v5  ;;  %v1751_v55 = vrot.slane %v1750_v53, 4  ;;  %v1736_v22 = vpop.f32.mrf.mxu1  ;;  %2081 = vmatpush.bf16.msra.mxu1 %v2950_v29  ;;  %2069 = vmatpush.bf16.msra.mxu0 %v2930_v43  ;;  %v2909_v5 = vld [vmem:[#allocation7] sm:$0xf]  ;;  %v3328_v29 = vld [vmem:[#allocation8 + $0x88] sm:$0xff] }
 0x494   :  { %2095 = vmatpush.bf16.msra.mxu2 %v2938_v47  ;;  %v2910_v30 = vor.u32 %v3281_v19, %v2909_v5  ;;  %v3318_v22 = vld [vmem:[#allocation8 + $0x38] sm:$0xff] }
 0x495   :  { %v1746_v61 = vrot.slane %v1745_v10, 2  ;;  %v1752_v63 = vadd.f32 %v1751_v55, %v1750_v53  ;;  %v2914_v53 = vor.u32 %v3279_v48, %v2911_v50  ;;  %v3334_v55 = vld [vmem:[#allocation8 + $0xb8] sm:$0xff] }
 0x496   :  { %2057 = vmatpush.bf16.msrb.mxu3 %v2910_v30 }
 0x497   :  { %v1747_v16 = vadd.f32 %v1746_v61, %v1745_v10  ;;  %v1753_v21 = vrot.slane %v1752_v63, 2  ;;  %2082 = vmatpush.bf16.msra.mxu1 %v2934_v44  ;;  %2070 = vmatpush.bf16.msra.mxu0 %v2914_v53  ;;  %v3326_v10 = vld [vmem:[#allocation8 + $0x78] sm:$0xff]  ;;  %v3332_v61 = vld [vmem:[#allocation8 + $0xa8] sm:$0xff] }
 0x498   :  { %2096 = vmatpush.bf16.msra.mxu2 %v2922_v54 }
 0x499   :  { %v1748_v12 = vrot.slane %v1747_v16, 1  ;;  %v1754_v39 = vadd.f32 %v1753_v21, %v1752_v63  ;;  %v3316_v63 = vld [vmem:[#allocation8 + $0x28] sm:$0xff]  ;;  %v3338_v21 = vld [vmem:[#allocation8 + $0xd8] sm:$0xff] }
 0x49a   :  { %2367 = vmatpush.bf16.msra.mxu3 %v3318_v22 }
 0x49b   :  { %v1749_v32 = vadd.f32 %v1748_v12, %v1747_v16  ;;  %v1755_v60 = vrot.slane %v1754_v39, 1  ;;  %2083 = vmatpush.bf16.msra.mxu1 %v2918_v17  ;;  %2380 = vmatpush.bf16.msrb.mxu0 %v3326_v10  ;;  %v3314_v16 = vld [vmem:[#allocation8 + $0x18] sm:$0xff] }
 0x49d   :  { %v1756_v62 = vadd.f32 %v1755_v60, %v1754_v39  ;;  %v1774_v3 = vpack.c.bf16 %v1749_v32, %v1749_v32  ;;  %v3313_v32 = vld [vmem:[#allocation8 + $0x10] sm:$0xff] }
 0x49e   :  { %2368 = vmatpush.bf16.msra.mxu3 %v3317_v59  ;;  %v3337_v60 = vld [vmem:[#allocation8 + $0xd0] sm:$0xff] }
 0x49f   :  { %v1775_v4 = vpack.c.bf16 %v1756_v62, %v1756_v62  ;;  %v1779_v33 = vunpack.c.l.b16 %v1774_v3  ;;  %2393 = vmatpush.bf16.msrb.mxu1 %v3334_v55  ;;  %2381 = vmatpush.bf16.msrb.mxu0 %v3325_v57  ;;  %v3327_v62 = vld [vmem:[#allocation8 + $0x80] sm:$0xff]  ;;  %v3312_v3 = vld [vmem:[#allocation8 + $0x8] sm:$0xff] }
 0x4a1   :  { %v1780_v34 = vunpack.c.l.b16 %v1775_v4  ;;  %v3336_v4 = vld [vmem:[#allocation8 + $0xc8] sm:$0xff] }
 0x4a2   :  { %2369 = vmatpush.bf16.msra.mxu3 %v3316_v63 }
 0x4a3   :  { %v1782_v35 = vsel %vm1781_vm2, %v1780_v34, %v1779_v33  ;;  %2394 = vmatpush.bf16.msrb.mxu1 %v3333_v58  ;;  %2382 = vmatpush.bf16.msrb.mxu0 %v3324_v49  ;;  %v3311_v33 = vld [vmem:[#allocation8] sm:$0xff] }
 0x4a4   :  { %v1783_v36 = vpack.c.b16 %v1782_v35, %v1782_v35  ;;  %v3335_v34 = vld [vmem:[#allocation8 + $0xc0] sm:$0xff]  ;;  %v1880_v35 = vld [vmem:[%s3972_s9] sm:$0xf] }
 0x4a5   :  { %v1884_v18 = vperm.slane %v1880_v35, 2  ;;  %v1882_v42 = vperm.slane %v1880_v35, 0  ;;  %v1885_v44 = vperm.slane %v1880_v35, 3 }
 0x4a6   :  { %1841 = vmatmul.bf16.vlgmr.msrb.gmra.mxu2 %v1783_v36  ;;  %2370 = vmatpush.bf16.msra.mxu3 %v3315_v11  ;;  %v1883_v36 = vperm.slane %v1880_v35, 1 }
 0x4a7   :  { %2406 = vmatpush.bf16.msrb.mxu2 %v3342_v56  ;;  %2395 = vmatpush.bf16.msrb.mxu1 %v3332_v61  ;;  %v3421_v56 = vld [vmem:[%s3971_s8 + $0x8] ss:$0 sm:$0xff] }
 0x4a8   :  { %2383 = vmatpush.bf16.msrb.mxu0 %v3323_v1 }
 0x4aa   :  { %2371 = vmatpush.bf16.msra.mxu3 %v3314_v16 }
 0x4ab   :  { %2407 = vmatpush.bf16.msrb.mxu2 %v3341_v8  ;;  %2396 = vmatpush.bf16.msrb.mxu1 %v3331_v7 }
 0x4ac   :  { %2384 = vmatpush.bf16.msrb.mxu0 %v3322_v14 }
 0x4ae   :  { %2372 = vmatpush.bf16.msra.mxu3 %v3313_v32 }
 0x4af   :  { %2408 = vmatpush.bf16.msrb.mxu2 %v3340_v0  ;;  %2397 = vmatpush.bf16.msrb.mxu1 %v3330_v15 }
 0x4b0   :  { %2385 = vmatpush.bf16.msrb.mxu0 %v3321_v28 }
 0x4b2   :  { %2373 = vmatpush.bf16.msra.mxu3 %v3312_v3 }
 0x4b3   :  { %2409 = vmatpush.bf16.msrb.mxu2 %v3339_v13  ;;  %2398 = vmatpush.bf16.msrb.mxu1 %v3329_v24 }
 0x4b4   :  { %2386 = vmatpush.bf16.msrb.mxu0 %v3320_v27 }
 0x4b6   :  { %2374 = vmatpush.bf16.msra.mxu3 %v3311_v33 }
 0x4b7   :  { %2410 = vmatpush.bf16.msrb.mxu2 %v3338_v21  ;;  %2399 = vmatpush.bf16.msrb.mxu1 %v3328_v29 }
 0x4b8   :  { %2387 = vmatpush.bf16.msrb.mxu0 %v3319_v9 }
 0x4bb   :  { %2411 = vmatpush.bf16.msrb.mxu2 %v3337_v60  ;;  %2400 = vmatpush.bf16.msrb.mxu1 %v3327_v62 }
 0x4bf   :  { %2412 = vmatpush.bf16.msrb.mxu2 %v3336_v4 }
 0x4c3   :  { %2413 = vmatpush.bf16.msrb.mxu2 %v3335_v34 }
 0x529   :  { %v1842_v25 = vpop.f32.mrf.mxu2 }
 0x52a   :  { %v1843_v31 = vadd.f32 %v3420_v26, %v1842_v25 }
 0x52c   :  { %v1846_v12 = vmax.f32 %v1843_v31, 0.0 }
 0x52e   :  { %v1879_v39 = vpack.c.bf16 %v1846_v12, %v1846_v12 }
 0x530   :  { %2058 = vmatmul.bf16.vlgmr.msrb.gmra.mxu3 %v1879_v39  ;;  %2071 = vmatmul.bf16.vlgmr.msra.gmra.mxu0 %v1879_v39 }
 0x531   :  { %2084 = vmatmul.bf16.vlgmr.msra.gmra.mxu1 %v1879_v39  ;;  %2097 = vmatmul.bf16.vlgmr.msra.gmra.mxu2 %v1879_v39  ;;  %v1844_v2 = vpop.f32.mrf.mxu2 }
 0x5ad   :  { %v2072_v37 = vpop.f32.mrf.mxu0 }
 0x5ae   :  { %v2073_v6 = vadd.f32 %v2072_v37, %v1883_v36  ;;  %v2085_v38 = vpop.f32.mrf.mxu1 }
 0x5af   :  { %v2086_v40 = vadd.f32 %v2085_v38, %v1884_v18 }
 0x5b0   :  { %v2103_v41 = vmax.f32 %v2073_v6, 0.0 }
 0x5b1   :  { %v2104_v43 = vmax.f32 %v2086_v40, 0.0 }
 0x5b2   :  { %v2171_v45 = vpack.c.bf16 %v2103_v41, %v2103_v41 }
 0x5b3   :  { %v2172_v46 = vpack.c.bf16 %v2104_v43, %v2104_v43  ;;  %v2059_v47 = vpop.f32.mrf.mxu3 }
 0x5b4   :  { %v2060_v5 = vadd.f32 %v2059_v47, %v1882_v42  ;;  %v2098_v19 = vpop.f32.mrf.mxu2  ;;  %2388 = vmatmul.bf16.vlgmr.msrb.gmra.mxu0 %v2171_v45 }
 0x5b5   :  { %v2099_v48 = vadd.f32 %v2098_v19, %v1885_v44  ;;  %2401 = vmatmul.bf16.vlgmr.msrb.gmra.mxu1 %v2172_v46  ;;  %v2074_v30 = vpop.f32.mrf.mxu0 }
 0x5b6   :  { %v2102_v50 = vmax.f32 %v2060_v5, 0.0  ;;  %v2087_v51 = vpop.f32.mrf.mxu1 }
 0x5b7   :  { %v2105_v52 = vmax.f32 %v2099_v48, 0.0 }
 0x5b8   :  { %v2170_v53 = vpack.c.bf16 %v2102_v50, %v2102_v50 }
 0x5b9   :  { %v2173_v17 = vpack.c.bf16 %v2105_v52, %v2105_v52 }
 0x5ba   :  { %2375 = vmatmul.bf16.vlgmr.msra.gmra.mxu3 %v2170_v53 }
 0x5bb   :  { %2414 = vmatmul.bf16.vlgmr.msrb.gmra.mxu2 %v2173_v17  ;;  %v2061_v23 = vpop.f32.mrf.mxu3 }
 0x5bc   :  { %v2100_v20 = vpop.f32.mrf.mxu2 }
 0x631   :  { %v2389_v54 = vpop.f32.mrf.mxu0 }
 0x632   :  { %v2402_v10 = vpop.f32.mrf.mxu1 }
 0x639   :  { %v2391_v55 = vpop.f32.mrf.mxu0 }
 0x63a   :  { %v2404_v22 = vpop.f32.mrf.mxu1 }
 0x63d   :  { %v2376_v57 = vpop.f32.mrf.mxu3 }
 0x63e   :  { %v2377_v58 = vadd.f32 %v3421_v56, %v2376_v57  ;;  %v2415_v59 = vpop.f32.mrf.mxu2 }
 0x640   :  { %v2390_v8 = vadd.f32 %v2389_v54, %v2377_v58 }
 0x642   :  { %v2403_v49 = vadd.f32 %v2402_v10, %v2390_v8 }
 0x644   :  { %v2416_v61 = vadd.f32 %v2415_v59, %v2403_v49 }
 0x645   :  { %v2378_v63 = vpop.f32.mrf.mxu3 }
 0x646   :  { %2419 = vst [vmem:[#allocation10] sm:$0x3] %v2416_v61  ;;  %v2417_v0 = vpop.f32.mrf.mxu2 }
 0x647   :  { %2430 = dma.vmem_to_hbm [thread:$0]  %s2426_s3, 32, %s2428_s20, [#allocation4]  }
 0x648   :  { %3548 = dma.done.wait [#allocation4], 32  }
 0x649   :  { %3549 = vsyncadd [#allocation4], 4294967264 }
 0x64a   :  { %2435 = vsyncpa [#allocation3], 1 }
 0x64b   :  { %2436 = vsyncpa [#allocation6], 1 }
 0x64c   :  { %2437 = vsyncpa [#allocation9], 1 }
 0x64d   :  { %2438 = vsyncpa [#allocation4], 1 }

</bundles_post_ra>
